<compile_context>
chip_gen: v5e
topology: v5e:2x2
jax: 0.10.0
libtpu: 0.0.40
codegen_flags: <defaults>
</compile_context>

<pallas_src>
import math

import jax
import jax.numpy as jnp
from jax.experimental import pallas as pl
from jax.experimental.pallas import tpu as pltpu

# ---- small synthetic config (deberta-v3-base shrunk for the demo) -----------
VOCAB = 128
B, S = 2, 8
H = 32              # hidden_size
NH = 4              # num_attention_heads
DH = H // NH        # head dim
FF = 64             # intermediate_size
NLAYERS = 2
NUM_LABELS = 3
LOGIT_PAD = 128     # lane-dense padded logits width
EPS = 1e-7          # DeBERTa layer_norm_eps

NSPLIT = 2          # batch shards on the 'parallel' grid axis (v7x dual-TC)
BH = B // NSPLIT    # batch elements per grid program
assert B % NSPLIT == 0


def _layernorm(x, g, b):
    mu = jnp.mean(x, axis=-1, keepdims=True)
    var = jnp.mean((x - mu) ** 2, axis=-1, keepdims=True)
    return (x - mu) * jax.lax.rsqrt(var + EPS) * g + b


# ----------------------------- fused kernel -----------------------------------
def fused_kernel(x_ref, mask_ref, bias_ref,
                 embg_ref, embb_ref,
                 wqkv_ref, bqkv_ref, wo_ref, bo_ref, g1_ref, b1_ref,
                 wi_ref, bi_ref, wo2_ref, bo2_ref, g2_ref, b2_ref,
                 wd_ref, bd_ref, wp_ref, bp_ref,
                 logits_ref, cls_ref,
                 hid_ref):
    """One grid step = (one batch shard) x (one encoder layer)."""
    l = pl.program_id(1)
    scale = jnp.float32(1.0 / math.sqrt(DH))

    # --- DebertaV2Embeddings: LayerNorm + token masking (first layer step only);
    #     dropout is identity in eval mode ---
    @pl.when(l == 0)
    def _():
        hid_ref[...] = (_layernorm(x_ref[...], embg_ref[...], embb_ref[...])
                        * mask_ref[...])

    x = hid_ref[...]                                      # [BH*S, H] f32
    xb = x.astype(jnp.bfloat16)

    # --- self-attention: QKV projection + head-batched scores / context ---
    qkv = jnp.dot(xb, wqkv_ref[0], preferred_element_type=jnp.float32) + bqkv_ref[0]
    q2, k2, v2 = qkv[:, :H], qkv[:, H:2 * H], qkv[:, 2 * H:]

    def split_heads(t):                                   # [BH*S, H] -> [BH*NH, S, DH]
        return jnp.stack(
            [t[b * S:(b + 1) * S, h * DH:(h + 1) * DH]
             for b in range(BH) for h in range(NH)], axis=0)

    q = split_heads(q2).astype(jnp.bfloat16)
    k = split_heads(k2).astype(jnp.bfloat16)
    v = split_heads(v2).astype(jnp.bfloat16)

    s = jnp.einsum('nqd,nkd->nqk', q, k,
                   preferred_element_type=jnp.float32) * scale
    s = s + bias_ref[...]                                 # [BH*NH, 1, S] key-mask bias
    s = s - jnp.max(s, axis=-1, keepdims=True)
    p = jnp.exp(s)
    p = p * pl.reciprocal(jnp.sum(p, axis=-1, keepdims=True), approx=True)

    ctx = jnp.einsum('nqk,nkd->nqd', p.astype(jnp.bfloat16), v,
                     preferred_element_type=jnp.float32)  # [BH*NH, S, DH]
    # Re-assemble the full [BH*S, H] context as ONE value (no masked per-head stores).
    ctx = jnp.concatenate(
        [jnp.concatenate([ctx[b * NH + h] for h in range(NH)], axis=-1)
         for b in range(BH)], axis=0)

    attn = jnp.dot(ctx.astype(jnp.bfloat16), wo_ref[0],
                   preferred_element_type=jnp.float32) + bo_ref[0]
    h1 = _layernorm(attn + x, g1_ref[0], b1_ref[0])

    # --- FFN ---
    ff = jax.nn.gelu(jnp.dot(h1.astype(jnp.bfloat16), wi_ref[0],
                             preferred_element_type=jnp.float32) + bi_ref[0])
    ff = jnp.dot(ff.astype(jnp.bfloat16), wo2_ref[0],
                 preferred_element_type=jnp.float32) + bo2_ref[0]
    out = _layernorm(ff + h1, g2_ref[0], b2_ref[0])
    hid_ref[...] = out

    # --- CLS pooling + DebertaClassificationHead (last layer step only) ---
    @pl.when(l == pl.num_programs(1) - 1)
    def _():
        if BH == 1:
            cls = out[0:1, :]                             # single CLS row
        else:
            cls = hid_ref[pl.ds(0, BH, stride=S), :]      # strided CLS gather
        cls_ref[0] = cls
        hdn = jnp.tanh(jnp.dot(cls.astype(jnp.bfloat16), wd_ref[...],
                               preferred_element_type=jnp.float32) + bd_ref[...])
        logits_ref[0] = jnp.dot(hdn.astype(jnp.bfloat16), wp_ref[...],
                                preferred_element_type=jnp.float32) + bp_ref[...]


# ----------------------------- specs / wrapper ---------------------------------
def _const_spec(shape):
    nd = len(shape)
    return pl.BlockSpec(shape, lambda i, l, _n=nd: (0,) * _n)


def _batch_spec(block_shape):
    nd = len(block_shape)
    return pl.BlockSpec(block_shape, lambda i, l, _n=nd: (i,) + (0,) * (_n - 1))


def _layer_spec(tail):
    nz = len(tail)
    return pl.BlockSpec((1,) + tuple(tail), lambda i, l, _n=nz: (l,) + (0,) * _n)


def run_fused(x, mask_tok, key_bias, p):
    in_specs = [
        _batch_spec((BH * S, H)),                   # embeddings
        _batch_spec((BH * S, 1)),                   # token mask
        _batch_spec((BH * NH, 1, S)),               # additive key-mask bias
        _const_spec((1, H)), _const_spec((1, H)),   # embedding LayerNorm
        _layer_spec((H, 3 * H)), _layer_spec((1, 3 * H)),   # qkv proj
        _layer_spec((H, H)), _layer_spec((1, H)),           # attn out proj
        _layer_spec((1, H)), _layer_spec((1, H)),           # ln1
        _layer_spec((H, FF)), _layer_spec((1, FF)),         # ffn in
        _layer_spec((FF, H)), _layer_spec((1, H)),          # ffn out
        _layer_spec((1, H)), _layer_spec((1, H)),           # ln2
        _const_spec((H, H)), _const_spec((1, H)),           # head dense
        _const_spec((H, LOGIT_PAD)), _const_spec((1, LOGIT_PAD)),  # head out_proj (padded)
    ]
    out_specs = (_batch_spec((1, BH, LOGIT_PAD)), _batch_spec((1, BH, H)))
    out_shape = (jax.ShapeDtypeStruct((NSPLIT, BH, LOGIT_PAD), jnp.float32),
                 jax.ShapeDtypeStruct((NSPLIT, BH, H), jnp.float32))

    # advisory cost estimate for the XLA scheduler
    flops = (NLAYERS * B * (2 * S * H * 3 * H + 4 * NH * S * S * DH
                            + 2 * S * H * H + 4 * S * H * FF)
             + B * (2 * H * H + 2 * H * LOGIT_PAD))
    transcendentals = NLAYERS * B * (NH * S * S + S * FF) + B * H
    bytes_weights = (NLAYERS * (H * 3 * H + H * H + H * FF + FF * H) * 2
                     + NLAYERS * (3 * H + 6 * H + FF) * 4
                     + (H * H + H * LOGIT_PAD) * 2 + (H + LOGIT_PAD) * 4 + 8 * H)
    bytes_act = (B * S * (H + 1) + B * NH * S) * 4 + B * (LOGIT_PAD + H) * 4
    cost = pl.CostEstimate(flops=int(flops), transcendentals=int(transcendentals),
                           bytes_accessed=int(bytes_weights + bytes_act))

    return pl.pallas_call(
        fused_kernel,
        grid=(NSPLIT, NLAYERS),
        in_specs=in_specs,
        out_specs=out_specs,
        out_shape=out_shape,
        scratch_shapes=[pltpu.VMEM((BH * S, H), jnp.float32)],  # hidden-state accumulator
        compiler_params=pltpu.CompilerParams(
            dimension_semantics=("parallel", "arbitrary"),
            vmem_limit_bytes=32 * 1024 * 1024),
        cost_estimate=cost,
    )(x, mask_tok, key_bias,
      p["emb_ln_g"], p["emb_ln_b"],
      p["wqkv"], p["bqkv"], p["wo"], p["bo"], p["ln1_g"], p["ln1_b"],
      p["wi"], p["bi"], p["wo2"], p["bo2"], p["ln2_g"], p["ln2_b"],
      p["head_wd"], p["head_bd"], p["head_wp"], p["head_bp"])


# ----------------------------- parameters -------------------------------------
def init_params(key):
    def nrm(k, shape):
        return 0.02 * jax.random.normal(k, shape, jnp.float32)

    keys = jax.random.split(key, 8)
    wp = nrm(keys[3], (H, NUM_LABELS))
    wp_pad = jnp.zeros((H, LOGIT_PAD), jnp.float32).at[:, :NUM_LABELS].set(wp)
    return {
        "word_emb": nrm(keys[0], (VOCAB, H)),
        "pos_emb": nrm(keys[1], (S, H)),                    # position_biased_input=True
        "emb_ln_g": jnp.ones((1, H), jnp.float32),
        "emb_ln_b": jnp.zeros((1, H), jnp.float32),
        # classification head (out_proj padded to a lane-dense 128-wide slab)
        "head_wd": nrm(keys[2], (H, H)).astype(jnp.bfloat16),
        "head_bd": jnp.zeros((1, H), jnp.float32),
        "head_wp": wp_pad.astype(jnp.bfloat16),
        "head_bp": jnp.zeros((1, LOGIT_PAD), jnp.float32),
        # stacked per-layer weights (streamed layer-by-layer through the grid axis);
        # matmul operands in bf16, biases / LayerNorm params in f32
        "wqkv": nrm(keys[4], (NLAYERS, H, 3 * H)).astype(jnp.bfloat16),
        "bqkv": jnp.zeros((NLAYERS, 1, 3 * H), jnp.float32),
        "wo": nrm(keys[5], (NLAYERS, H, H)).astype(jnp.bfloat16),
        "bo": jnp.zeros((NLAYERS, 1, H), jnp.float32),
        "ln1_g": jnp.ones((NLAYERS, 1, H), jnp.float32),
        "ln1_b": jnp.zeros((NLAYERS, 1, H), jnp.float32),
        "wi": nrm(keys[6], (NLAYERS, H, FF)).astype(jnp.bfloat16),
        "bi": jnp.zeros((NLAYERS, 1, FF), jnp.float32),
        "wo2": nrm(keys[7], (NLAYERS, FF, H)).astype(jnp.bfloat16),
        "bo2": jnp.zeros((NLAYERS, 1, H), jnp.float32),
        "ln2_g": jnp.ones((NLAYERS, 1, H), jnp.float32),
        "ln2_b": jnp.zeros((NLAYERS, 1, H), jnp.float32),
    }


# ----------------------------- model forward ----------------------------------
def deberta_forward(params, input_ids, att_mask, return_hidden=False):
    """input_ids: int32 [B, S]; att_mask: float32 [B, S] (1 = keep, 0 = pad)."""
    att = att_mask.astype(jnp.float32)
    # embedding gather (glue, plain XLA) + absolute position embedding
    emb = jnp.take(params["word_emb"], input_ids, axis=0) + params["pos_emb"][None]
    x = emb.reshape(B * S, H)
    mask_tok = att.reshape(B * S, 1)                        # post-LN token mask
    # additive key-mask bias, pre-broadcast over heads: [B*NH, 1, S]
    key_bias = (1.0 - att) * jnp.float32(-1e9)
    key_bias = jnp.broadcast_to(key_bias[:, None, None, :], (B, NH, 1, S))
    key_bias = key_bias.reshape(B * NH, 1, S)

    logits_pad, cls = run_fused(x, mask_tok, key_bias, params)
    logits = logits_pad.reshape(B, LOGIT_PAD)[:, :NUM_LABELS]
    cls = cls.reshape(B, H)
    if return_hidden:
        return logits, cls
    return logits


# ----------------------------- pure-JAX reference ------------------------------
def deberta_reference(params, input_ids, att_mask):
    """f32 reference with the same weights (sanity check for the fused kernel)."""
    f32 = lambda a: a.astype(jnp.float32)
    att = att_mask.astype(jnp.float32)
    emb = jnp.take(params["word_emb"], input_ids, axis=0) + params["pos_emb"][None]
    x = _layernorm(emb.reshape(B * S, H), params["emb_ln_g"], params["emb_ln_b"])
    x = x * att.reshape(B * S, 1)
    bias = ((1.0 - att) * jnp.float32(-1e9))[:, None, None, :]   # [B,1,1,S]

    def heads(t):
        return t.reshape(B, S, NH, DH).transpose(0, 2, 1, 3)     # [B,NH,S,DH]

    for l in range(NLAYERS):
        qkv = x @ f32(params["wqkv"][l]) + params["bqkv"][l]
        q, k, v = qkv[:, :H], qkv[:, H:2 * H], qkv[:, 2 * H:]
        s = jnp.einsum('bhqd,bhkd->bhqk', heads(q), heads(k)) / math.sqrt(DH) + bias
        p = jax.nn.softmax(s, axis=-1)
        ctx = jnp.einsum('bhqk,bhkd->bhqd', p, heads(v))
        ctx = ctx.transpose(0, 2, 1, 3).reshape(B * S, H)
        h1 = _layernorm(ctx @ f32(params["wo"][l]) + params["bo"][l] + x,
                        params["ln1_g"][l], params["ln1_b"][l])
        ff = jax.nn.gelu(h1 @ f32(params["wi"][l]) + params["bi"][l])
        ff = ff @ f32(params["wo2"][l]) + params["bo2"][l]
        x = _layernorm(ff + h1, params["ln2_g"][l], params["ln2_b"][l])

    cls = x.reshape(B, S, H)[:, 0, :]
    hdn = jnp.tanh(cls @ f32(params["head_wd"]) + params["head_bd"])
    logits = (hdn @ f32(params["head_wp"]) + params["head_bp"])[:, :NUM_LABELS]
    return logits, cls


# ----------------------------- main --------------------------------------------
if __name__ == "__main__":
    key = jax.random.PRNGKey(0)
    k_param, k_ids = jax.random.split(key)
    params = init_params(k_param)

    input_ids = jax.random.randint(k_ids, (B, S), 0, VOCAB, dtype=jnp.int32)
    att_mask = jnp.array([[1, 1, 1, 1, 1, 1, 1, 1],
                          [1, 1, 1, 1, 1, 1, 0, 0]], dtype=jnp.float32)

    logits, cls_hidden = deberta_forward(params, input_ids, att_mask, return_hidden=True)
    jax.block_until_ready((logits, cls_hidden))
    assert logits.shape == (B, NUM_LABELS) and cls_hidden.shape == (B, H)
    assert bool(jnp.all(jnp.isfinite(logits))) and bool(jnp.all(jnp.isfinite(cls_hidden)))

    # loose-tolerance check vs. an f32 reference (bf16 matmuls + approx reciprocal)
    ref_logits, ref_cls = deberta_reference(params, input_ids, att_mask)
    assert bool(jnp.allclose(logits, ref_logits, rtol=1e-1, atol=1e-2)), "logits mismatch"
    assert bool(jnp.allclose(cls_hidden, ref_cls, rtol=1e-1, atol=1e-2)), "cls mismatch"

    print("KERNEL_OK")
</pallas_src>

<mosaic_0001>
module attributes {stable_mosaic.version = 11 : i64} {
  func.func @fused_kernel(%arg0: i32, %arg1: i32, %arg2: memref<8x32xf32, #tpu.memory_space<vmem>>, %arg3: memref<8x1xf32, #tpu.memory_space<vmem>>, %arg4: memref<4x1x8xf32, #tpu.memory_space<vmem>>, %arg5: memref<1x32xf32, #tpu.memory_space<vmem>>, %arg6: memref<1x32xf32, #tpu.memory_space<vmem>>, %arg7: memref<1x32x96xbf16, #tpu.memory_space<vmem>>, %arg8: memref<1x1x96xf32, #tpu.memory_space<vmem>>, %arg9: memref<1x32x32xbf16, #tpu.memory_space<vmem>>, %arg10: memref<1x1x32xf32, #tpu.memory_space<vmem>>, %arg11: memref<1x1x32xf32, #tpu.memory_space<vmem>>, %arg12: memref<1x1x32xf32, #tpu.memory_space<vmem>>, %arg13: memref<1x32x64xbf16, #tpu.memory_space<vmem>>, %arg14: memref<1x1x64xf32, #tpu.memory_space<vmem>>, %arg15: memref<1x64x32xbf16, #tpu.memory_space<vmem>>, %arg16: memref<1x1x32xf32, #tpu.memory_space<vmem>>, %arg17: memref<1x1x32xf32, #tpu.memory_space<vmem>>, %arg18: memref<1x1x32xf32, #tpu.memory_space<vmem>>, %arg19: memref<32x32xbf16, #tpu.memory_space<vmem>>, %arg20: memref<1x32xf32, #tpu.memory_space<vmem>>, %arg21: memref<32x128xbf16, #tpu.memory_space<vmem>>, %arg22: memref<1x128xf32, #tpu.memory_space<vmem>>, %arg23: memref<1x1x128xf32, #tpu.memory_space<vmem>>, %arg24: memref<1x1x32xf32, #tpu.memory_space<vmem>>, %arg25: memref<8x32xf32, #tpu.memory_space<vmem>>) attributes {dimension_semantics = [#tpu.dimension_semantics<parallel>, #tpu.dimension_semantics<arbitrary>], iteration_bounds = array<i64: 2, 2>, scalar_prefetch = 0 : i64, scratch_operands = 1 : i64, tpu.core_type = #tpu.core_type<tc>, window_params = [{transform_indices = @transform_0, window_bounds = array<i64: 8, 32>}, {transform_indices = @transform_1, window_bounds = array<i64: 8, 1>}, {transform_indices = @transform_2, window_bounds = array<i64: 4, 1, 8>}, {pipeline_mode = #tpu.pipeline_mode<synchronous>, transform_indices = @transform_3, window_bounds = array<i64: 1, 32>}, {pipeline_mode = #tpu.pipeline_mode<synchronous>, transform_indices = @transform_4, window_bounds = array<i64: 1, 32>}, {transform_indices = @transform_5, window_bounds = array<i64: 1, 32, 96>}, {transform_indices = @transform_6, window_bounds = array<i64: 1, 1, 96>}, {transform_indices = @transform_7, window_bounds = array<i64: 1, 32, 32>}, {transform_indices = @transform_8, window_bounds = array<i64: 1, 1, 32>}, {transform_indices = @transform_9, window_bounds = array<i64: 1, 1, 32>}, {transform_indices = @transform_10, window_bounds = array<i64: 1, 1, 32>}, {transform_indices = @transform_11, window_bounds = array<i64: 1, 32, 64>}, {transform_indices = @transform_12, window_bounds = array<i64: 1, 1, 64>}, {transform_indices = @transform_13, window_bounds = array<i64: 1, 64, 32>}, {transform_indices = @transform_14, window_bounds = array<i64: 1, 1, 32>}, {transform_indices = @transform_15, window_bounds = array<i64: 1, 1, 32>}, {transform_indices = @transform_16, window_bounds = array<i64: 1, 1, 32>}, {pipeline_mode = #tpu.pipeline_mode<synchronous>, transform_indices = @transform_17, window_bounds = array<i64: 32, 32>}, {pipeline_mode = #tpu.pipeline_mode<synchronous>, transform_indices = @transform_18, window_bounds = array<i64: 1, 32>}, {pipeline_mode = #tpu.pipeline_mode<synchronous>, transform_indices = @transform_19, window_bounds = array<i64: 32, 128>}, {pipeline_mode = #tpu.pipeline_mode<synchronous>, transform_indices = @transform_20, window_bounds = array<i64: 1, 128>}, {transform_indices = @transform_21, window_bounds = array<i64: 1, 1, 128>}, {transform_indices = @transform_22, window_bounds = array<i64: 1, 1, 32>}]} {
    %c0_i32 = arith.constant 0 : i32
    %0 = arith.cmpi eq, %arg1, %c0_i32 : i32
    %1 = arith.extui %0 : i1 to i32
    %c0_i32_0 = arith.constant 0 : i32
    %2 = arith.cmpi ne, %1, %c0_i32_0 : i32
    scf.if %2 {
      %c0_66 = arith.constant 0 : index
      %c0_67 = arith.constant 0 : index
      %167 = vector.load %arg2[%c0_66, %c0_67] : memref<8x32xf32, #tpu.memory_space<vmem>>, vector<8x32xf32>
      %c0_68 = arith.constant 0 : index
      %c0_69 = arith.constant 0 : index
      %168 = vector.load %arg5[%c0_68, %c0_69] : memref<1x32xf32, #tpu.memory_space<vmem>>, vector<1x32xf32>
      %c0_70 = arith.constant 0 : index
      %c0_71 = arith.constant 0 : index
      %169 = vector.load %arg6[%c0_70, %c0_71] : memref<1x32xf32, #tpu.memory_space<vmem>>, vector<1x32xf32>
      %cst_72 = arith.constant dense<0.000000e+00> : vector<8xf32>
      %170 = vector.multi_reduction <add>, %167, %cst_72 [1] : vector<8x32xf32> to vector<8xf32>
      %171 = vector.shape_cast %170 : vector<8xf32> to vector<8x1xf32>
      %cst_73 = arith.constant 3.200000e+01 : f32
      %172 = vector.broadcast %cst_73 : f32 to vector<8x1xf32>
      %173 = arith.divf %171, %172 : vector<8x1xf32>
      %174 = vector.broadcast %173 : vector<8x1xf32> to vector<8x32xf32>
      %175 = arith.subf %167, %174 : vector<8x32xf32>
      %176 = arith.mulf %175, %175 : vector<8x32xf32>
      %cst_74 = arith.constant dense<0.000000e+00> : vector<8xf32>
      %177 = vector.multi_reduction <add>, %176, %cst_74 [1] : vector<8x32xf32> to vector<8xf32>
      %178 = vector.shape_cast %177 : vector<8xf32> to vector<8x1xf32>
      %cst_75 = arith.constant 3.200000e+01 : f32
      %179 = vector.broadcast %cst_75 : f32 to vector<8x1xf32>
      %180 = arith.divf %178, %179 : vector<8x1xf32>
      %181 = vector.broadcast %173 : vector<8x1xf32> to vector<8x32xf32>
      %182 = arith.subf %167, %181 : vector<8x32xf32>
      %cst_76 = arith.constant 1.000000e-07 : f32
      %183 = vector.broadcast %cst_76 : f32 to vector<8x1xf32>
      %184 = arith.addf %180, %183 : vector<8x1xf32>
      %185 = math.rsqrt %184 : vector<8x1xf32>
      %186 = vector.broadcast %185 : vector<8x1xf32> to vector<8x32xf32>
      %187 = arith.mulf %182, %186 : vector<8x32xf32>
      %188 = vector.broadcast %168 : vector<1x32xf32> to vector<8x32xf32>
      %189 = arith.mulf %187, %188 : vector<8x32xf32>
      %190 = vector.broadcast %169 : vector<1x32xf32> to vector<8x32xf32>
      %191 = arith.addf %189, %190 : vector<8x32xf32>
      %c0_77 = arith.constant 0 : index
      %c0_78 = arith.constant 0 : index
      %192 = vector.load %arg3[%c0_77, %c0_78] : memref<8x1xf32, #tpu.memory_space<vmem>>, vector<8x1xf32>
      %193 = vector.broadcast %192 : vector<8x1xf32> to vector<8x32xf32>
      %194 = arith.mulf %191, %193 : vector<8x32xf32>
      %c0_79 = arith.constant 0 : index
      %c0_80 = arith.constant 0 : index
      %195 = vector.load %arg25[%c0_79, %c0_80] : memref<8x32xf32, #tpu.memory_space<vmem>>, vector<8x32xf32>
      tpu.vector_store %arg25[%c0_79, %c0_80], %194 {strides = array<i32>} : memref<8x32xf32, #tpu.memory_space<vmem>>, vector<8x32xf32>,
    } else {
    }
    %c0 = arith.constant 0 : index
    %c0_1 = arith.constant 0 : index
    %3 = vector.load %arg25[%c0, %c0_1] : memref<8x32xf32, #tpu.memory_space<vmem>>, vector<8x32xf32>
    %4 = arith.truncf %3 : vector<8x32xf32> to vector<8x32xbf16>
    %c0_2 = arith.constant 0 : index
    %c0_3 = arith.constant 0 : index
    %c0_4 = arith.constant 0 : index
    %5 = vector.load %arg7[%c0_2, %c0_3, %c0_4] : memref<1x32x96xbf16, #tpu.memory_space<vmem>>, vector<1x32x96xbf16>
    %6 = vector.shape_cast %5 : vector<1x32x96xbf16> to vector<32x96xbf16>
    %cst = arith.constant dense<0.000000e+00> : vector<8x96xf32>
    %7 = tpu.matmul %4, %6, %cst {dimension_numbers = #tpu.dot_dimension_numbers<[1], [0], [0], [1], [0, 0, 1, 1], [], []>} : vector<8x32xbf16>, vector<32x96xbf16>, vector<8x96xf32> -> vector<8x96xf32>
    %c0_5 = arith.constant 0 : index
    %c0_6 = arith.constant 0 : index
    %c0_7 = arith.constant 0 : index
    %8 = vector.load %arg8[%c0_5, %c0_6, %c0_7] : memref<1x1x96xf32, #tpu.memory_space<vmem>>, vector<1x1x96xf32>
    %9 = vector.shape_cast %8 : vector<1x1x96xf32> to vector<1x96xf32>
    %10 = vector.broadcast %9 : vector<1x96xf32> to vector<8x96xf32>
    %11 = arith.addf %7, %10 : vector<8x96xf32>
    %12 = vector.extract_strided_slice %11 {offsets = [0, 0], sizes = [8, 32], strides = [1, 1]} : vector<8x96xf32> to vector<8x32xf32>
    %13 = vector.extract_strided_slice %11 {offsets = [0, 32], sizes = [8, 32], strides = [1, 1]} : vector<8x96xf32> to vector<8x32xf32>
    %14 = vector.extract_strided_slice %11 {offsets = [0, 64], sizes = [8, 32], strides = [1, 1]} : vector<8x96xf32> to vector<8x32xf32>
    %15 = vector.extract_strided_slice %12 {offsets = [0, 0], sizes = [8, 8], strides = [1, 1]} : vector<8x32xf32> to vector<8x8xf32>
    %16 = vector.extract_strided_slice %12 {offsets = [0, 8], sizes = [8, 8], strides = [1, 1]} : vector<8x32xf32> to vector<8x8xf32>
    %17 = vector.extract_strided_slice %12 {offsets = [0, 16], sizes = [8, 8], strides = [1, 1]} : vector<8x32xf32> to vector<8x8xf32>
    %18 = vector.extract_strided_slice %12 {offsets = [0, 24], sizes = [8, 8], strides = [1, 1]} : vector<8x32xf32> to vector<8x8xf32>
    %19 = vector.shape_cast %15 : vector<8x8xf32> to vector<1x8x8xf32>
    %20 = vector.shape_cast %16 : vector<8x8xf32> to vector<1x8x8xf32>
    %21 = vector.shape_cast %17 : vector<8x8xf32> to vector<1x8x8xf32>
    %22 = vector.shape_cast %18 : vector<8x8xf32> to vector<1x8x8xf32>
    %23 = tpu.concatenate %19, %20, %21, %22 in 0 : vector<1x8x8xf32>, vector<1x8x8xf32>, vector<1x8x8xf32>, vector<1x8x8xf32> -> vector<4x8x8xf32>
    %24 = arith.truncf %23 : vector<4x8x8xf32> to vector<4x8x8xbf16>
    %25 = vector.extract_strided_slice %13 {offsets = [0, 0], sizes = [8, 8], strides = [1, 1]} : vector<8x32xf32> to vector<8x8xf32>
    %26 = vector.extract_strided_slice %13 {offsets = [0, 8], sizes = [8, 8], strides = [1, 1]} : vector<8x32xf32> to vector<8x8xf32>
    %27 = vector.extract_strided_slice %13 {offsets = [0, 16], sizes = [8, 8], strides = [1, 1]} : vector<8x32xf32> to vector<8x8xf32>
    %28 = vector.extract_strided_slice %13 {offsets = [0, 24], sizes = [8, 8], strides = [1, 1]} : vector<8x32xf32> to vector<8x8xf32>
    %29 = vector.shape_cast %25 : vector<8x8xf32> to vector<1x8x8xf32>
    %30 = vector.shape_cast %26 : vector<8x8xf32> to vector<1x8x8xf32>
    %31 = vector.shape_cast %27 : vector<8x8xf32> to vector<1x8x8xf32>
    %32 = vector.shape_cast %28 : vector<8x8xf32> to vector<1x8x8xf32>
    %33 = tpu.concatenate %29, %30, %31, %32 in 0 : vector<1x8x8xf32>, vector<1x8x8xf32>, vector<1x8x8xf32>, vector<1x8x8xf32> -> vector<4x8x8xf32>
    %34 = arith.truncf %33 : vector<4x8x8xf32> to vector<4x8x8xbf16>
    %35 = vector.extract_strided_slice %14 {offsets = [0, 0], sizes = [8, 8], strides = [1, 1]} : vector<8x32xf32> to vector<8x8xf32>
    %36 = vector.extract_strided_slice %14 {offsets = [0, 8], sizes = [8, 8], strides = [1, 1]} : vector<8x32xf32> to vector<8x8xf32>
    %37 = vector.extract_strided_slice %14 {offsets = [0, 16], sizes = [8, 8], strides = [1, 1]} : vector<8x32xf32> to vector<8x8xf32>
    %38 = vector.extract_strided_slice %14 {offsets = [0, 24], sizes = [8, 8], strides = [1, 1]} : vector<8x32xf32> to vector<8x8xf32>
    %39 = vector.shape_cast %35 : vector<8x8xf32> to vector<1x8x8xf32>
    %40 = vector.shape_cast %36 : vector<8x8xf32> to vector<1x8x8xf32>
    %41 = vector.shape_cast %37 : vector<8x8xf32> to vector<1x8x8xf32>
    %42 = vector.shape_cast %38 : vector<8x8xf32> to vector<1x8x8xf32>
    %43 = tpu.concatenate %39, %40, %41, %42 in 0 : vector<1x8x8xf32>, vector<1x8x8xf32>, vector<1x8x8xf32>, vector<1x8x8xf32> -> vector<4x8x8xf32>
    %44 = arith.truncf %43 : vector<4x8x8xf32> to vector<4x8x8xbf16>
    "tpu.trace_start"() <{level = 10 : i32, message = "nqd,nkd->nqk"}> : () -> ()
    %cst_8 = arith.constant dense<0.000000e+00> : vector<4x8x8xf32>
    %45 = tpu.matmul %24, %34, %cst_8 {dimension_numbers = #tpu.dot_dimension_numbers<[2], [2], [1], [1], [0, 0, 0, 1, 1, 1], [0], [0]>} : vector<4x8x8xbf16>, vector<4x8x8xbf16>, vector<4x8x8xf32> -> vector<4x8x8xf32>
    "tpu.trace_stop"() : () -> ()
    %cst_9 = arith.constant 0.353553385 : f32
    %46 = vector.broadcast %cst_9 : f32 to vector<4x8x8xf32>
    %47 = arith.mulf %45, %46 : vector<4x8x8xf32>
    %c0_10 = arith.constant 0 : index
    %c0_11 = arith.constant 0 : index
    %c0_12 = arith.constant 0 : index
    %48 = vector.load %arg4[%c0_10, %c0_11, %c0_12] : memref<4x1x8xf32, #tpu.memory_space<vmem>>, vector<4x1x8xf32>
    %49 = vector.broadcast %48 : vector<4x1x8xf32> to vector<4x8x8xf32>
    %50 = arith.addf %47, %49 : vector<4x8x8xf32>
    %cst_13 = arith.constant dense<0xFF800000> : vector<4x8xf32>
    %51 = vector.multi_reduction <maximumf>, %50, %cst_13 [2] : vector<4x8x8xf32> to vector<4x8xf32>
    %52 = vector.shape_cast %51 : vector<4x8xf32> to vector<4x8x1xf32>
    %53 = vector.broadcast %52 : vector<4x8x1xf32> to vector<4x8x8xf32>
    %54 = arith.subf %50, %53 : vector<4x8x8xf32>
    %55 = math.exp %54 : vector<4x8x8xf32>
    %cst_14 = arith.constant dense<0.000000e+00> : vector<4x8xf32>
    %56 = vector.multi_reduction <add>, %55, %cst_14 [2] : vector<4x8x8xf32> to vector<4x8xf32>
    %57 = vector.shape_cast %56 : vector<4x8xf32> to vector<4x8x1xf32>
    %58 = tpu.reciprocal %57 {approx = true} : vector<4x8x1xf32> -> vector<4x8x1xf32>
    %59 = vector.broadcast %58 : vector<4x8x1xf32> to vector<4x8x8xf32>
    %60 = arith.mulf %55, %59 : vector<4x8x8xf32>
    %61 = arith.truncf %60 : vector<4x8x8xf32> to vector<4x8x8xbf16>
    "tpu.trace_start"() <{level = 10 : i32, message = "nqk,nkd->nqd"}> : () -> ()
    %cst_15 = arith.constant dense<0.000000e+00> : vector<4x8x8xf32>
    %62 = tpu.matmul %61, %44, %cst_15 {dimension_numbers = #tpu.dot_dimension_numbers<[2], [1], [1], [2], [0, 0, 0, 1, 1, 2], [0], [0]>} : vector<4x8x8xbf16>, vector<4x8x8xbf16>, vector<4x8x8xf32> -> vector<4x8x8xf32>
    "tpu.trace_stop"() : () -> ()
    %63 = vector.extract_strided_slice %62 {offsets = [0, 0, 0], sizes = [1, 8, 8], strides = [1, 1, 1]} : vector<4x8x8xf32> to vector<1x8x8xf32>
    %64 = vector.shape_cast %63 : vector<1x8x8xf32> to vector<8x8xf32>
    %65 = vector.extract_strided_slice %62 {offsets = [1, 0, 0], sizes = [1, 8, 8], strides = [1, 1, 1]} : vector<4x8x8xf32> to vector<1x8x8xf32>
    %66 = vector.shape_cast %65 : vector<1x8x8xf32> to vector<8x8xf32>
    %67 = vector.extract_strided_slice %62 {offsets = [2, 0, 0], sizes = [1, 8, 8], strides = [1, 1, 1]} : vector<4x8x8xf32> to vector<1x8x8xf32>
    %68 = vector.shape_cast %67 : vector<1x8x8xf32> to vector<8x8xf32>
    %69 = vector.extract_strided_slice %62 {offsets = [3, 0, 0], sizes = [1, 8, 8], strides = [1, 1, 1]} : vector<4x8x8xf32> to vector<1x8x8xf32>
    %70 = vector.shape_cast %69 : vector<1x8x8xf32> to vector<8x8xf32>
    %71 = tpu.concatenate %64, %66, %68, %70 in 1 : vector<8x8xf32>, vector<8x8xf32>, vector<8x8xf32>, vector<8x8xf32> -> vector<8x32xf32>
    %72 = arith.truncf %71 : vector<8x32xf32> to vector<8x32xbf16>
    %c0_16 = arith.constant 0 : index
    %c0_17 = arith.constant 0 : index
    %c0_18 = arith.constant 0 : index
    %73 = vector.load %arg9[%c0_16, %c0_17, %c0_18] : memref<1x32x32xbf16, #tpu.memory_space<vmem>>, vector<1x32x32xbf16>
    %74 = vector.shape_cast %73 : vector<1x32x32xbf16> to vector<32x32xbf16>
    %cst_19 = arith.constant dense<0.000000e+00> : vector<8x32xf32>
    %75 = tpu.matmul %72, %74, %cst_19 {dimension_numbers = #tpu.dot_dimension_numbers<[1], [0], [0], [1], [0, 0, 1, 1], [], []>} : vector<8x32xbf16>, vector<32x32xbf16>, vector<8x32xf32> -> vector<8x32xf32>
    %c0_20 = arith.constant 0 : index
    %c0_21 = arith.constant 0 : index
    %c0_22 = arith.constant 0 : index
    %76 = vector.load %arg10[%c0_20, %c0_21, %c0_22] : memref<1x1x32xf32, #tpu.memory_space<vmem>>, vector<1x1x32xf32>
    %77 = vector.shape_cast %76 : vector<1x1x32xf32> to vector<1x32xf32>
    %78 = vector.broadcast %77 : vector<1x32xf32> to vector<8x32xf32>
    %79 = arith.addf %75, %78 : vector<8x32xf32>
    %80 = arith.addf %79, %3 : vector<8x32xf32>
    %c0_23 = arith.constant 0 : index
    %c0_24 = arith.constant 0 : index
    %c0_25 = arith.constant 0 : index
    %81 = vector.load %arg11[%c0_23, %c0_24, %c0_25] : memref<1x1x32xf32, #tpu.memory_space<vmem>>, vector<1x1x32xf32>
    %82 = vector.shape_cast %81 : vector<1x1x32xf32> to vector<1x32xf32>
    %c0_26 = arith.constant 0 : index
    %c0_27 = arith.constant 0 : index
    %c0_28 = arith.constant 0 : index
    %83 = vector.load %arg12[%c0_26, %c0_27, %c0_28] : memref<1x1x32xf32, #tpu.memory_space<vmem>>, vector<1x1x32xf32>
    %84 = vector.shape_cast %83 : vector<1x1x32xf32> to vector<1x32xf32>
    %cst_29 = arith.constant dense<0.000000e+00> : vector<8xf32>
    %85 = vector.multi_reduction <add>, %80, %cst_29 [1] : vector<8x32xf32> to vector<8xf32>
    %86 = vector.shape_cast %85 : vector<8xf32> to vector<8x1xf32>
    %cst_30 = arith.constant 3.200000e+01 : f32
    %87 = vector.broadcast %cst_30 : f32 to vector<8x1xf32>
    %88 = arith.divf %86, %87 : vector<8x1xf32>
    %89 = vector.broadcast %88 : vector<8x1xf32> to vector<8x32xf32>
    %90 = arith.subf %80, %89 : vector<8x32xf32>
    %91 = arith.mulf %90, %90 : vector<8x32xf32>
    %cst_31 = arith.constant dense<0.000000e+00> : vector<8xf32>
    %92 = vector.multi_reduction <add>, %91, %cst_31 [1] : vector<8x32xf32> to vector<8xf32>
    %93 = vector.shape_cast %92 : vector<8xf32> to vector<8x1xf32>
    %cst_32 = arith.constant 3.200000e+01 : f32
    %94 = vector.broadcast %cst_32 : f32 to vector<8x1xf32>
    %95 = arith.divf %93, %94 : vector<8x1xf32>
    %96 = vector.broadcast %88 : vector<8x1xf32> to vector<8x32xf32>
    %97 = arith.subf %80, %96 : vector<8x32xf32>
    %cst_33 = arith.constant 1.000000e-07 : f32
    %98 = vector.broadcast %cst_33 : f32 to vector<8x1xf32>
    %99 = arith.addf %95, %98 : vector<8x1xf32>
    %100 = math.rsqrt %99 : vector<8x1xf32>
    %101 = vector.broadcast %100 : vector<8x1xf32> to vector<8x32xf32>
    %102 = arith.mulf %97, %101 : vector<8x32xf32>
    %103 = vector.broadcast %82 : vector<1x32xf32> to vector<8x32xf32>
    %104 = arith.mulf %102, %103 : vector<8x32xf32>
    %105 = vector.broadcast %84 : vector<1x32xf32> to vector<8x32xf32>
    %106 = arith.addf %104, %105 : vector<8x32xf32>
    %107 = arith.truncf %106 : vector<8x32xf32> to vector<8x32xbf16>
    %c0_34 = arith.constant 0 : index
    %c0_35 = arith.constant 0 : index
    %c0_36 = arith.constant 0 : index
    %108 = vector.load %arg13[%c0_34, %c0_35, %c0_36] : memref<1x32x64xbf16, #tpu.memory_space<vmem>>, vector<1x32x64xbf16>
    %109 = vector.shape_cast %108 : vector<1x32x64xbf16> to vector<32x64xbf16>
    %cst_37 = arith.constant dense<0.000000e+00> : vector<8x64xf32>
    %110 = tpu.matmul %107, %109, %cst_37 {dimension_numbers = #tpu.dot_dimension_numbers<[1], [0], [0], [1], [0, 0, 1, 1], [], []>} : vector<8x32xbf16>, vector<32x64xbf16>, vector<8x64xf32> -> vector<8x64xf32>
    %c0_38 = arith.constant 0 : index
    %c0_39 = arith.constant 0 : index
    %c0_40 = arith.constant 0 : index
    %111 = vector.load %arg14[%c0_38, %c0_39, %c0_40] : memref<1x1x64xf32, #tpu.memory_space<vmem>>, vector<1x1x64xf32>
    %112 = vector.shape_cast %111 : vector<1x1x64xf32> to vector<1x64xf32>
    %113 = vector.broadcast %112 : vector<1x64xf32> to vector<8x64xf32>
    %114 = arith.addf %110, %113 : vector<8x64xf32>
    %115 = arith.mulf %114, %114 : vector<8x64xf32>
    %116 = arith.mulf %114, %115 : vector<8x64xf32>
    %cst_41 = arith.constant 4.471500e-02 : f32
    %117 = vector.broadcast %cst_41 : f32 to vector<8x64xf32>
    %118 = arith.mulf %117, %116 : vector<8x64xf32>
    %119 = arith.addf %114, %118 : vector<8x64xf32>
    %cst_42 = arith.constant 0.797884583 : f32
    %120 = vector.broadcast %cst_42 : f32 to vector<8x64xf32>
    %121 = arith.mulf %120, %119 : vector<8x64xf32>
    %122 = math.tanh %121 : vector<8x64xf32>
    %cst_43 = arith.constant 1.000000e+00 : f32
    %123 = vector.broadcast %cst_43 : f32 to vector<8x64xf32>
    %124 = arith.addf %123, %122 : vector<8x64xf32>
    %cst_44 = arith.constant 5.000000e-01 : f32
    %125 = vector.broadcast %cst_44 : f32 to vector<8x64xf32>
    %126 = arith.mulf %125, %124 : vector<8x64xf32>
    %127 = arith.mulf %114, %126 : vector<8x64xf32>
    %128 = arith.truncf %127 : vector<8x64xf32> to vector<8x64xbf16>
    %c0_45 = arith.constant 0 : index
    %c0_46 = arith.constant 0 : index
    %c0_47 = arith.constant 0 : index
    %129 = vector.load %arg15[%c0_45, %c0_46, %c0_47] : memref<1x64x32xbf16, #tpu.memory_space<vmem>>, vector<1x64x32xbf16>
    %130 = vector.shape_cast %129 : vector<1x64x32xbf16> to vector<64x32xbf16>
    %cst_48 = arith.constant dense<0.000000e+00> : vector<8x32xf32>
    %131 = tpu.matmul %128, %130, %cst_48 {dimension_numbers = #tpu.dot_dimension_numbers<[1], [0], [0], [1], [0, 0, 1, 1], [], []>} : vector<8x64xbf16>, vector<64x32xbf16>, vector<8x32xf32> -> vector<8x32xf32>
    %c0_49 = arith.constant 0 : index
    %c0_50 = arith.constant 0 : index
    %c0_51 = arith.constant 0 : index
    %132 = vector.load %arg16[%c0_49, %c0_50, %c0_51] : memref<1x1x32xf32, #tpu.memory_space<vmem>>, vector<1x1x32xf32>
    %133 = vector.shape_cast %132 : vector<1x1x32xf32> to vector<1x32xf32>
    %134 = vector.broadcast %133 : vector<1x32xf32> to vector<8x32xf32>
    %135 = arith.addf %131, %134 : vector<8x32xf32>
    %136 = arith.addf %135, %106 : vector<8x32xf32>
    %c0_52 = arith.constant 0 : index
    %c0_53 = arith.constant 0 : index
    %c0_54 = arith.constant 0 : index
    %137 = vector.load %arg17[%c0_52, %c0_53, %c0_54] : memref<1x1x32xf32, #tpu.memory_space<vmem>>, vector<1x1x32xf32>
    %138 = vector.shape_cast %137 : vector<1x1x32xf32> to vector<1x32xf32>
    %c0_55 = arith.constant 0 : index
    %c0_56 = arith.constant 0 : index
    %c0_57 = arith.constant 0 : index
    %139 = vector.load %arg18[%c0_55, %c0_56, %c0_57] : memref<1x1x32xf32, #tpu.memory_space<vmem>>, vector<1x1x32xf32>
    %140 = vector.shape_cast %139 : vector<1x1x32xf32> to vector<1x32xf32>
    %cst_58 = arith.constant dense<0.000000e+00> : vector<8xf32>
    %141 = vector.multi_reduction <add>, %136, %cst_58 [1] : vector<8x32xf32> to vector<8xf32>
    %142 = vector.shape_cast %141 : vector<8xf32> to vector<8x1xf32>
    %cst_59 = arith.constant 3.200000e+01 : f32
    %143 = vector.broadcast %cst_59 : f32 to vector<8x1xf32>
    %144 = arith.divf %142, %143 : vector<8x1xf32>
    %145 = vector.broadcast %144 : vector<8x1xf32> to vector<8x32xf32>
    %146 = arith.subf %136, %145 : vector<8x32xf32>
    %147 = arith.mulf %146, %146 : vector<8x32xf32>
    %cst_60 = arith.constant dense<0.000000e+00> : vector<8xf32>
    %148 = vector.multi_reduction <add>, %147, %cst_60 [1] : vector<8x32xf32> to vector<8xf32>
    %149 = vector.shape_cast %148 : vector<8xf32> to vector<8x1xf32>
    %cst_61 = arith.constant 3.200000e+01 : f32
    %150 = vector.broadcast %cst_61 : f32 to vector<8x1xf32>
    %151 = arith.divf %149, %150 : vector<8x1xf32>
    %152 = vector.broadcast %144 : vector<8x1xf32> to vector<8x32xf32>
    %153 = arith.subf %136, %152 : vector<8x32xf32>
    %cst_62 = arith.constant 1.000000e-07 : f32
    %154 = vector.broadcast %cst_62 : f32 to vector<8x1xf32>
    %155 = arith.addf %151, %154 : vector<8x1xf32>
    %156 = math.rsqrt %155 : vector<8x1xf32>
    %157 = vector.broadcast %156 : vector<8x1xf32> to vector<8x32xf32>
    %158 = arith.mulf %153, %157 : vector<8x32xf32>
    %159 = vector.broadcast %138 : vector<1x32xf32> to vector<8x32xf32>
    %160 = arith.mulf %158, %159 : vector<8x32xf32>
    %161 = vector.broadcast %140 : vector<1x32xf32> to vector<8x32xf32>
    %162 = arith.addf %160, %161 : vector<8x32xf32>
    %c0_63 = arith.constant 0 : index
    %c0_64 = arith.constant 0 : index
    %163 = vector.load %arg25[%c0_63, %c0_64] : memref<8x32xf32, #tpu.memory_space<vmem>>, vector<8x32xf32>
    tpu.vector_store %arg25[%c0_63, %c0_64], %162 {strides = array<i32>} : memref<8x32xf32, #tpu.memory_space<vmem>>, vector<8x32xf32>,
    %c1_i32 = arith.constant 1 : i32
    %164 = arith.cmpi eq, %arg1, %c1_i32 : i32
    %165 = arith.extui %164 : i1 to i32
    %c0_i32_65 = arith.constant 0 : i32
    %166 = arith.cmpi ne, %165, %c0_i32_65 : i32
    scf.if %166 {
      %167 = vector.extract_strided_slice %162 {offsets = [0, 0], sizes = [1, 32], strides = [1, 1]} : vector<8x32xf32> to vector<1x32xf32>
      %c0_66 = arith.constant 0 : index
      %c0_67 = arith.constant 0 : index
      %c0_68 = arith.constant 0 : index
      %168 = vector.load %arg24[%c0_66, %c0_67, %c0_68] : memref<1x1x32xf32, #tpu.memory_space<vmem>>, vector<1x1x32xf32>
      %169 = vector.shape_cast %168 : vector<1x1x32xf32> to vector<1x32xf32>
      %170 = vector.shape_cast %167 : vector<1x32xf32> to vector<1x1x32xf32>
      tpu.vector_store %arg24[%c0_66, %c0_67, %c0_68], %170 {strides = array<i32>} : memref<1x1x32xf32, #tpu.memory_space<vmem>>, vector<1x1x32xf32>,
      %171 = arith.truncf %167 : vector<1x32xf32> to vector<1x32xbf16>
      %c0_69 = arith.constant 0 : index
      %c0_70 = arith.constant 0 : index
      %172 = vector.load %arg19[%c0_69, %c0_70] : memref<32x32xbf16, #tpu.memory_space<vmem>>, vector<32x32xbf16>
      %cst_71 = arith.constant dense<0.000000e+00> : vector<1x32xf32>
      %173 = tpu.matmul %171, %172, %cst_71 {dimension_numbers = #tpu.dot_dimension_numbers<[1], [0], [0], [1], [0, 0, 1, 1], [], []>} : vector<1x32xbf16>, vector<32x32xbf16>, vector<1x32xf32> -> vector<1x32xf32>
      %c0_72 = arith.constant 0 : index
      %c0_73 = arith.constant 0 : index
      %174 = vector.load %arg20[%c0_72, %c0_73] : memref<1x32xf32, #tpu.memory_space<vmem>>, vector<1x32xf32>
      %175 = arith.addf %173, %174 : vector<1x32xf32>
      %176 = math.tanh %175 : vector<1x32xf32>
      %177 = arith.truncf %176 : vector<1x32xf32> to vector<1x32xbf16>
      %c0_74 = arith.constant 0 : index
      %c0_75 = arith.constant 0 : index
      %178 = vector.load %arg21[%c0_74, %c0_75] : memref<32x128xbf16, #tpu.memory_space<vmem>>, vector<32x128xbf16>
      %cst_76 = arith.constant dense<0.000000e+00> : vector<1x128xf32>
      %179 = tpu.matmul %177, %178, %cst_76 {dimension_numbers = #tpu.dot_dimension_numbers<[1], [0], [0], [1], [0, 0, 1, 1], [], []>} : vector<1x32xbf16>, vector<32x128xbf16>, vector<1x128xf32> -> vector<1x128xf32>
      %c0_77 = arith.constant 0 : index
      %c0_78 = arith.constant 0 : index
      %180 = vector.load %arg22[%c0_77, %c0_78] : memref<1x128xf32, #tpu.memory_space<vmem>>, vector<1x128xf32>
      %181 = arith.addf %179, %180 : vector<1x128xf32>
      %c0_79 = arith.constant 0 : index
      %c0_80 = arith.constant 0 : index
      %c0_81 = arith.constant 0 : index
      %182 = vector.load %arg23[%c0_79, %c0_80, %c0_81] : memref<1x1x128xf32, #tpu.memory_space<vmem>>, vector<1x1x128xf32>
      %183 = vector.shape_cast %182 : vector<1x1x128xf32> to vector<1x128xf32>
      %184 = vector.shape_cast %181 : vector<1x128xf32> to vector<1x1x128xf32>
      tpu.vector_store %arg23[%c0_79, %c0_80, %c0_81], %184 {strides = array<i32>} : memref<1x1x128xf32, #tpu.memory_space<vmem>>, vector<1x1x128xf32>,
    } else {
    }
    return
  }
  func.func @transform_0(%arg0: i32, %arg1: i32) -> (i32, i32) {
    %c0_i32 = arith.constant 0 : i32
    %c0_i32_0 = arith.constant 0 : i32
    return %arg0, %c0_i32 : i32, i32
  }
  func.func @transform_1(%arg0: i32, %arg1: i32) -> (i32, i32) {
    %c0_i32 = arith.constant 0 : i32
    %c0_i32_0 = arith.constant 0 : i32
    return %arg0, %c0_i32 : i32, i32
  }
  func.func @transform_2(%arg0: i32, %arg1: i32) -> (i32, i32, i32) {
    %c0_i32 = arith.constant 0 : i32
    %c0_i32_0 = arith.constant 0 : i32
    %c0_i32_1 = arith.constant 0 : i32
    return %arg0, %c0_i32, %c0_i32_0 : i32, i32, i32
  }
  func.func @transform_3(%arg0: i32, %arg1: i32) -> (i32, i32) {
    %c0_i32 = arith.constant 0 : i32
    %c0_i32_0 = arith.constant 0 : i32
    %c0_i32_1 = arith.constant 0 : i32
    return %c0_i32, %c0_i32_0 : i32, i32
  }
  func.func @transform_4(%arg0: i32, %arg1: i32) -> (i32, i32) {
    %c0_i32 = arith.constant 0 : i32
    %c0_i32_0 = arith.constant 0 : i32
    %c0_i32_1 = arith.constant 0 : i32
    return %c0_i32, %c0_i32_0 : i32, i32
  }
  func.func @transform_5(%arg0: i32, %arg1: i32) -> (i32, i32, i32) {
    %c0_i32 = arith.constant 0 : i32
    %c0_i32_0 = arith.constant 0 : i32
    %c0_i32_1 = arith.constant 0 : i32
    return %arg1, %c0_i32, %c0_i32_0 : i32, i32, i32
  }
  func.func @transform_6(%arg0: i32, %arg1: i32) -> (i32, i32, i32) {
    %c0_i32 = arith.constant 0 : i32
    %c0_i32_0 = arith.constant 0 : i32
    %c0_i32_1 = arith.constant 0 : i32
    return %arg1, %c0_i32, %c0_i32_0 : i32, i32, i32
  }
  func.func @transform_7(%arg0: i32, %arg1: i32) -> (i32, i32, i32) {
    %c0_i32 = arith.constant 0 : i32
    %c0_i32_0 = arith.constant 0 : i32
    %c0_i32_1 = arith.constant 0 : i32
    return %arg1, %c0_i32, %c0_i32_0 : i32, i32, i32
  }
  func.func @transform_8(%arg0: i32, %arg1: i32) -> (i32, i32, i32) {
    %c0_i32 = arith.constant 0 : i32
    %c0_i32_0 = arith.constant 0 : i32
    %c0_i32_1 = arith.constant 0 : i32
    return %arg1, %c0_i32, %c0_i32_0 : i32, i32, i32
  }
  func.func @transform_9(%arg0: i32, %arg1: i32) -> (i32, i32, i32) {
    %c0_i32 = arith.constant 0 : i32
    %c0_i32_0 = arith.constant 0 : i32
    %c0_i32_1 = arith.constant 0 : i32
    return %arg1, %c0_i32, %c0_i32_0 : i32, i32, i32
  }
  func.func @transform_10(%arg0: i32, %arg1: i32) -> (i32, i32, i32) {
    %c0_i32 = arith.constant 0 : i32
    %c0_i32_0 = arith.constant 0 : i32
    %c0_i32_1 = arith.constant 0 : i32
    return %arg1, %c0_i32, %c0_i32_0 : i32, i32, i32
  }
  func.func @transform_11(%arg0: i32, %arg1: i32) -> (i32, i32, i32) {
    %c0_i32 = arith.constant 0 : i32
    %c0_i32_0 = arith.constant 0 : i32
    %c0_i32_1 = arith.constant 0 : i32
    return %arg1, %c0_i32, %c0_i32_0 : i32, i32, i32
  }
  func.func @transform_12(%arg0: i32, %arg1: i32) -> (i32, i32, i32) {
    %c0_i32 = arith.constant 0 : i32
    %c0_i32_0 = arith.constant 0 : i32
    %c0_i32_1 = arith.constant 0 : i32
    return %arg1, %c0_i32, %c0_i32_0 : i32, i32, i32
  }
  func.func @transform_13(%arg0: i32, %arg1: i32) -> (i32, i32, i32) {
    %c0_i32 = arith.constant 0 : i32
    %c0_i32_0 = arith.constant 0 : i32
    %c0_i32_1 = arith.constant 0 : i32
    return %arg1, %c0_i32, %c0_i32_0 : i32, i32, i32
  }
  func.func @transform_14(%arg0: i32, %arg1: i32) -> (i32, i32, i32) {
    %c0_i32 = arith.constant 0 : i32
    %c0_i32_0 = arith.constant 0 : i32
    %c0_i32_1 = arith.constant 0 : i32
    return %arg1, %c0_i32, %c0_i32_0 : i32, i32, i32
  }
  func.func @transform_15(%arg0: i32, %arg1: i32) -> (i32, i32, i32) {
    %c0_i32 = arith.constant 0 : i32
    %c0_i32_0 = arith.constant 0 : i32
    %c0_i32_1 = arith.constant 0 : i32
    return %arg1, %c0_i32, %c0_i32_0 : i32, i32, i32
  }
  func.func @transform_16(%arg0: i32, %arg1: i32) -> (i32, i32, i32) {
    %c0_i32 = arith.constant 0 : i32
    %c0_i32_0 = arith.constant 0 : i32
    %c0_i32_1 = arith.constant 0 : i32
    return %arg1, %c0_i32, %c0_i32_0 : i32, i32, i32
  }
  func.func @transform_17(%arg0: i32, %arg1: i32) -> (i32, i32) {
    %c0_i32 = arith.constant 0 : i32
    %c0_i32_0 = arith.constant 0 : i32
    %c0_i32_1 = arith.constant 0 : i32
    return %c0_i32, %c0_i32_0 : i32, i32
  }
  func.func @transform_18(%arg0: i32, %arg1: i32) -> (i32, i32) {
    %c0_i32 = arith.constant 0 : i32
    %c0_i32_0 = arith.constant 0 : i32
    %c0_i32_1 = arith.constant 0 : i32
    return %c0_i32, %c0_i32_0 : i32, i32
  }
  func.func @transform_19(%arg0: i32, %arg1: i32) -> (i32, i32) {
    %c0_i32 = arith.constant 0 : i32
    %c0_i32_0 = arith.constant 0 : i32
    %c0_i32_1 = arith.constant 0 : i32
    return %c0_i32, %c0_i32_0 : i32, i32
  }
  func.func @transform_20(%arg0: i32, %arg1: i32) -> (i32, i32) {
    %c0_i32 = arith.constant 0 : i32
    %c0_i32_0 = arith.constant 0 : i32
    %c0_i32_1 = arith.constant 0 : i32
    return %c0_i32, %c0_i32_0 : i32, i32
  }
  func.func @transform_21(%arg0: i32, %arg1: i32) -> (i32, i32, i32) {
    %c0_i32 = arith.constant 0 : i32
    %c0_i32_0 = arith.constant 0 : i32
    %c0_i32_1 = arith.constant 0 : i32
    return %arg0, %c0_i32, %c0_i32_0 : i32, i32, i32
  }
  func.func @transform_22(%arg0: i32, %arg1: i32) -> (i32, i32, i32) {
    %c0_i32 = arith.constant 0 : i32
    %c0_i32_0 = arith.constant 0 : i32
    %c0_i32_1 = arith.constant 0 : i32
    return %arg0, %c0_i32, %c0_i32_0 : i32, i32, i32
  }
}

</mosaic_0001>

<bundles_post_ra>
// kernel: tpu_custom_call.1
= control target key start
LH: loop header
LB: loop body
LE: loop exit
PB: predicated region body
PF: predicated region fallthrough
CT: control target
= control target key end

     0   :  { %s3738_s0 = inlined_call_operand.vmem [shape: f32[16,32], index: 0, kind: input, shape index: {}]   ;;  %s3739_s1 = inlined_call_operand.vmem [shape: f32[16,1], index: 1, kind: input, shape index: {}]   ;;  %s3740_s2 = inlined_call_operand.hbm [shape: f32[8,1,8], index: 2, kind: input, shape index: {}]   ;;  %s3741_s3 = inlined_call_operand.hbm [shape: f32[1,32], index: 3, kind: input, shape index: {}]   ;;  %s3742_s4 = inlined_call_operand.hbm [shape: f32[1,32], index: 4, kind: input, shape index: {}]   ;;  %s3743_s5 = inlined_call_operand.vmem [shape: bf16[2,32,96], index: 5, kind: input, shape index: {}]   ;;  %s3744_s6 = inlined_call_operand.hbm [shape: f32[2,1,96], index: 6, kind: input, shape index: {}]   ;;  %s3745_s7 = inlined_call_operand.vmem [shape: bf16[2,32,32], index: 7, kind: input, shape index: {}]   ;;  %s3746_s8 = inlined_call_operand.hbm [shape: f32[2,1,32], index: 8, kind: input, shape index: {}]   ;;  %s3747_s9 = inlined_call_operand.hbm [shape: f32[2,1,32], index: 9, kind: input, shape index: {}]   ;;  %s3748_s10 = inlined_call_operand.hbm [shape: f32[2,1,32], index: 10, kind: input, shape index: {}]   ;;  %s3749_s11 = inlined_call_operand.vmem [shape: bf16[2,32,64], index: 11, kind: input, shape index: {}]   ;;  %s3750_s12 = inlined_call_operand.hbm [shape: f32[2,1,64], index: 12, kind: input, shape index: {}]   ;;  %s3751_s13 = inlined_call_operand.vmem [shape: bf16[2,64,32], index: 13, kind: input, shape index: {}]   ;;  %s3752_s14 = inlined_call_operand.hbm [shape: f32[2,1,32], index: 14, kind: input, shape index: {}]   ;;  %s3753_s15 = inlined_call_operand.hbm [shape: f32[2,1,32], index: 15, kind: input, shape index: {}]   ;;  %s3754_s16 = inlined_call_operand.hbm [shape: f32[2,1,32], index: 16, kind: input, shape index: {}]   ;;  %s3755_s17 = inlined_call_operand.vmem [shape: bf16[32,32], index: 17, kind: input, shape index: {}]   ;;  %s3756_s18 = inlined_call_operand.vmem [shape: f32[1,32], index: 18, kind: input, shape index: {}]   ;;  %s3757_s19 = inlined_call_operand.hbm [shape: bf16[32,128], index: 19, kind: input, shape index: {}]   ;;  %s3758_s20 = inlined_call_operand.vmem [shape: f32[1,128], index: 20, kind: input, shape index: {}]   ;;  %s3759_s21 = inlined_call_operand.hbm [shape: f32[2,1,128], index: 21, kind: output, shape index: {0}]   ;;  %s3760_s22 = inlined_call_operand.hbm [shape: f32[2,1,32], index: 22, kind: output, shape index: {1}]  }
   0x1   :  { %3785 = sst [smem:[#allocation48_spill]] %s3738_s0 }
   0x2   :  { %3786 = sst [smem:[#allocation49_spill]] %s3739_s1 }
   0x3   :  { %3787 = sst [smem:[#allocation50_spill]] %s3740_s2 }
   0x4   :  { %3788 = sst [smem:[#allocation51_spill]] %s3741_s3 }
   0x5   :  { %3789 = sst [smem:[#allocation52_spill]] %s3742_s4 }
   0x6   :  { %3790 = sst [smem:[#allocation53_spill]] %s3743_s5 }
   0x7   :  { %3791 = sst [smem:[#allocation54_spill]] %s3744_s6 }
   0x8   :  { %3792 = sst [smem:[#allocation55_spill]] %s3745_s7 }
   0x9   :  { %3793 = sst [smem:[#allocation56_spill]] %s3746_s8 }
   0xa   :  { %3794 = sst [smem:[#allocation57_spill]] %s3747_s9 }
   0xb   :  { %3795 = sst [smem:[#allocation58_spill]] %s3748_s10 }
   0xc   :  { %3796 = sst [smem:[#allocation59_spill]] %s3749_s11 }
   0xd   :  { %3797 = sst [smem:[#allocation60_spill]] %s3750_s12 }
   0xe   :  { %3798 = sst [smem:[#allocation61_spill]] %s3751_s13 }
   0xf   :  { %3799 = sst [smem:[#allocation62_spill]] %s3752_s14 }
  0x10   :  { %3800 = sst [smem:[#allocation63_spill]] %s3753_s15 }
  0x11   :  { %3801 = sst [smem:[#allocation64_spill]] %s3754_s16 }
  0x12   :  { %3802 = sst [smem:[#allocation65_spill]] %s3755_s17 }
  0x13   :  { %3803 = sst [smem:[#allocation66_spill]] %s3756_s18 }
  0x14   :  { %3804 = sst [smem:[#allocation67_spill]] %s3757_s19 }
  0x15   :  { %3805 = sst [smem:[#allocation68_spill]] %s3758_s20 }
  0x16   :  { %3806 = sst [smem:[#allocation69_spill]] %s3759_s21 }
  0x17   :  { %3807 = sst [smem:[#allocation70_spill]] %s3760_s22 }
  0x18   :  { %28 = vsyncpa [#allocation4], 0 }
  0x19   :  { %30 = vsyncpa [#allocation4 + $0x1], 0 }
  0x1a   :  { %31 = vsyncpa [#allocation7], 0 }
  0x1b   :  { %32 = vsyncpa [#allocation10], 0 }
  0x1c   :  { %34 = vsyncpa [#allocation10 + $0x1], 0 }
  0x1d   :  { %35 = vsyncpa [#allocation13], 0 }
  0x1e   :  { %37 = vsyncpa [#allocation13 + $0x1], 0 }
  0x1f   :  { %38 = vsyncpa [#allocation16], 0 }
  0x20   :  { %40 = vsyncpa [#allocation16 + $0x1], 0 }
  0x21   :  { %41 = vsyncpa [#allocation19], 0 }
  0x22   :  { %43 = vsyncpa [#allocation19 + $0x1], 0 }
  0x23   :  { %44 = vsyncpa [#allocation22], 0 }
  0x24   :  { %45 = vsyncpa [#allocation5], 0 }
  0x25   :  { %47 = vsyncpa [#allocation5 + $0x1], 0 }
  0x26   :  { %48 = vsyncpa [#allocation25], 0 }
  0x27   :  { %50 = vsyncpa [#allocation25 + $0x1], 0  ;;  %s3222_s3 = smov 0   ;;  %s3224_s28 = smov 0  }
  0x28   :  { %s3226_s29 = smov 0   ;;  %s3228_s30 = smov 0  }
  0x29   :  { %s3230_s4 = smov 0   ;;  %s3232_s0 = smov 0  }
  0x2a   :  { %s3234_s23 = smov 0   ;;  %s3236_s1 = smov 0  }
  0x2b   :  { %s3238_s5 = smov 0   ;;  %s3240_s24 = smov 0  }
  0x2c   :  { %s3242_s6 = smov 0  }
  0x2d LB: > { %3808 = sst [smem:[#allocation35_spill]] %s3051_s28  ;;  %s3276_s25 = sadd.s32 4294967295, %s3087_s6   ;;  %s3087_s6 = sphi %s3242_s6, %s56_s6   ;;  %s3083_s24 = sphi %s3240_s24, %s3886_s24   ;;  %s3079_s5 = sphi %s3238_s5, %s3892_s5   ;;  %s3075_s1 = sphi %s3236_s1, %s3884_s1   ;;  %s3071_s23 = sphi %s3234_s23, %s3883_s23   ;;  %s3067_s0 = sphi %s3232_s0, %s3891_s0   ;;  %s3063_s4 = sphi %s3230_s4, %s3890_s4   ;;  %s3059_s30 = sphi %s3228_s30, %s3889_s30   ;;  %s3055_s29 = sphi %s3226_s29, %s3888_s29   ;;  %s3051_s28 = sphi %s3224_s28, %s3887_s28   ;;  %s3047_s3 = sphi %s3222_s3, %s3881_s3  }
  0x2e   : > { %3809 = sst [smem:[#allocation36_spill]] %s3059_s30  ;;  %s2195_s26 = sadd.s32 4294967294, %s3087_s6  }
  0x2f   : > { %3810 = sst [smem:[#allocation37_spill]] %s3071_s23  ;;  %p135_p0 = scmp.eq.s32.totalorder %s3087_s6, 0 }
  0x30   : > { %3811 = sst [smem:[#allocation38_spill]] %s3075_s1  ;;  %p140_p1 = scmp.ne.s32.totalorder %s3063_s4, %s3059_s30 }
  0x31   : > { %3812 = sst [smem:[#allocation39_spill]] %s3079_s5  ;;  %p3776_p2 = scmp.eq.s32.totalorder %s3276_s25, 0 }
  0x32   : > { %3813 = sst [smem:[#allocation40_spill]] %s3083_s24  ;;  %p228_p3 = scmp.ne.s32.totalorder %s3055_s29, %s3051_s28 }
  0x33   : > { %p234_p4 = scmp.ne.s32.totalorder %s3051_s28, %s3047_s3  ;;  %p3289_p5 = por %p3776_p2, %p140_p1 }
  0x34   : > { %p602_p6 = scmp.eq.s32.totalorder %s3276_s25, 3  ;;  %p3296_p7 = por %p228_p3, %p135_p0 }
  0x35   : > { %s3814_s27 = scalar_select %p3289_p5, 1, 0 }
  0x36   : > { %p3302_p8 = por %p234_p4, %p3776_p2  ;;  %p608_p9 = scmp.eq.s32.totalorder %s2195_s26, 3 }
  0x37   : > { %3815 = sst [smem:[#allocation41_spill]] %s3814_s27  ;;  %p2196_p10 = scmp.ge.s32.totalorder %s3087_s6, 1 }
  0x38   : > { %s3817_s2 = scalar_select %p3302_p8, 1, 0 }
  0x39   : > { %p641_p11 = scmp.lt.s32.totalorder %s3087_s6, 5  ;;  %p3308_p12 = por %p608_p9, %p140_p1 }
  0x3a   : > { %3818 = sst [smem:[#allocation42_spill]] %s3817_s2  ;;  %s3089_s26 = smov [#allocation6]  }
  0x3b   : > { %s3819_s3 = scalar_select %p3308_p12, 1, 0 }
  0x3c   : > { %s3821_s20 = sld [smem:[#allocation51_spill]]  ;;  %p3315_p13 = pnand %p2196_p10, %p641_p11 }
  0x3d   : > { %3820 = sst [smem:[#allocation43_spill]] %s3819_s3  ;;  %s655_s13 = sshll.u32 %s3089_s26, 4  ;;  %s656_s13 = int_to_ptr.vmem [resolvable:$true] %s655_s13 }
  0x3e   : > { %p2344_p3 = pneg %p3315_p13  ;;  %p2392_p1 = scmp.lt.s32.totalorder %s3087_s6, 4 }
  0x3f   : > { %s3337_s21 = sand.u32 1, %s3087_s6   ;;  %s3342_s30 = sand.u32 1, %s3055_s29  }
  0x40   : > { %p3324_p4 = pnand %p2344_p3, %p3776_p2  ;;  %p3332_p9 = pnand %p2392_p1, %p3296_p7 }
  0x41   : > { %s3825_s7 = sld [smem:[#allocation54_spill]]  ;;  %s747_s1 = scalar_lea.vmem [#allocation9], %s3342_s30 }
  0x42   : > { %s653_s18 = sshll.u32 %s3821_s20, 4  ;;  %s754_s2 = sshll.u32 %s747_s1, 4  ;;  %s654_s18 = int_to_ptr.hbm [resolvable:$true] %s653_s18  ;;  %s755_s2 = int_to_ptr.vmem [resolvable:$true] %s754_s2 }
  0x43   : > { %2347 = dma.hbm_to_vmem [thread:$0]  (!%p3324_p4), %s654_s18, 16, %s656_s13, [#allocation7]  }
  0x44   : > { %s3774_s28 = scalar_lea.sflag [#allocation10], %s3337_s21  ;;  %s3826_s9 = sld [smem:[#allocation57_spill]] }
  0x45   : > { %s789_s26 = scalar_lea.vmem [#allocation12], %s3342_s30  ;;  %s3775_s1 = scalar_lea.sflag [#allocation13], %s3337_s21 }
  0x46   : > { %s3827_s12 = sld [smem:[#allocation60_spill]]  ;;  %s831_s13 = scalar_lea.vmem [#allocation15], %s3342_s30 }
  0x47   : > { %s750_s22 = scalar_lea.hbm %s3825_s7, %s3079_s5  ;;  %s838_s18 = sshll.u32 %s831_s13, 4  ;;  %s839_s18 = int_to_ptr.vmem [resolvable:$true] %s838_s18 }
  0x48   : > { %s752_s23 = sshll.u32 %s750_s22, 4  ;;  %s796_s22 = sshll.u32 %s789_s26, 4  ;;  %s753_s23 = int_to_ptr.hbm [resolvable:$true] %s752_s23  ;;  %s797_s22 = int_to_ptr.vmem [resolvable:$true] %s796_s22 }
  0x49   : > { %2360 = dma.hbm_to_vmem [thread:$0]  (!%p3332_p9), %s753_s23, 16, %s755_s2, %s3774_s28  }
  0x4a   : > { %s792_s11 = scalar_lea.hbm %s3826_s9, %s3079_s5  ;;  %s3828_s15 = sld [smem:[#allocation63_spill]] }
  0x4b   : > { %s794_s7 = sshll.u32 %s792_s11, 4  ;;  %s3778_s11 = scalar_lea.sflag [#allocation16], %s3337_s21  ;;  %s795_s7 = int_to_ptr.hbm [resolvable:$true] %s794_s7 }
  0x4c   : > { %2366 = dma.hbm_to_vmem [thread:$0]  (!%p3332_p9), %s795_s7, 16, %s797_s22, %s3775_s1  }
  0x4d   : > { %s834_s2 = scalar_lea.hbm %s3827_s12, %s3079_s5  ;;  %s873_s1 = scalar_lea.vmem [#allocation18], %s3342_s30 }
  0x4e   : > { %s836_s28 = sshll.u32 %s834_s2, 4  ;;  %s880_s27 = sshll.u32 %s873_s1, 4  ;;  %s837_s28 = int_to_ptr.hbm [resolvable:$true] %s836_s28  ;;  %s881_s27 = int_to_ptr.vmem [resolvable:$true] %s880_s27 }
  0x4f   : > { %2372 = dma.hbm_to_vmem [thread:$0]  (!%p3332_p9), %s837_s28, 16, %s839_s18, %s3778_s11  }
  0x50   : > { %s876_s7 = scalar_lea.hbm %s3828_s15, %s3079_s5  ;;  %s3777_s23 = scalar_lea.sflag [#allocation19], %s3337_s21 }
  0x51   : > { %s878_s22 = sshll.u32 %s876_s7, 4  ;;  %s3829_s12 = sld [smem:[#allocation52_spill]]  ;;  %s879_s22 = int_to_ptr.hbm [resolvable:$true] %s878_s22 }
  0x52   : > { %2378 = dma.hbm_to_vmem [thread:$0]  (!%p3332_p9), %s879_s22, 16, %s881_s27, %s3777_s23  }
  0x53   : > { %s3090_s9 = smov [#allocation8]   ;;  %s3830_s19 = sld [smem:[#allocation67_spill]] }
  0x54   : > { %s667_s18 = sshll.u32 %s3090_s9, 4  ;;  %s3091_s22 = smov [#allocation21]   ;;  %s668_s18 = int_to_ptr.vmem [resolvable:$true] %s667_s18 }
  0x55   : > { %s3092_s27 = smov 64   ;;  %s3093_s2 = smov 4  }
  0x56   : > { %s65_s13 = sadd.s32 1, %s3079_s5  ;;  %s68_s9 = sadd.s32 1, %s3083_s24 }
  0x57   : > { %s665_s28 = sshll.u32 %s3829_s12, 4  ;;  %s684_s12 = sshll.u32 %s3091_s22, 4  ;;  %s666_s28 = int_to_ptr.hbm [resolvable:$true] %s665_s28  ;;  %s685_s12 = int_to_ptr.vmem [resolvable:$true] %s684_s12 }
  0x58   : > { %2350 = dma.hbm_to_vmem [thread:$0]  (!%p3324_p4), %s666_s28, 16, %s668_s18, [#allocation7]  }
  0x59   : > { %s682_s7 = sshll.u32 %s3830_s19, 4  ;;  %p66_p7 = scmp.ge.s32.totalorder %s65_s13, 2  ;;  %s683_s7 = int_to_ptr.hbm [resolvable:$true] %s682_s7 }
  0x5a   : > { %2353 = dma.hbm_to_vmem [thread:$0]  (!%p3324_p4), %s683_s7, 256, %s685_s12, [#allocation22], %s3092_s27, %s3092_s27, %s3093_s2  }
  0x5b   : > { %s127_s1 = sadd.s32 1, %s3067_s0  ;;  %p134_p10 = scmp.ne.s32.totalorder %s3067_s0, %s3063_s4 }
  0x5c   : > { %s715_s28 = sand.u32 1, %s3067_s0   ;;  %s3894_s13 = smov (%p66_p7, %s65_s13), 0 }
  0x5d   : > { %3831 = sst [smem:[#allocation44_spill]] %s3894_s13  ;;  %s3896_s9 = smov (!%p66_p7, %s68_s9), %s3083_s24 }
  0x5e   : > { %p3405_p11 = por %p135_p0, %p134_p10  ;;  %s218_s3 = ssub.s32 %s3079_s5, %s3894_s13 }
  0x5f   : > { %p70_p3 = scmp.ge.s32.totalorder %s3896_s9, 2  ;;  %p219_p4 = scmp.eq.s32.totalorder %s218_s3, 0 }
  0x60   : > { %p3413_p2 = por %p602_p6, %p134_p10  ;;  %s3836_s7 = sadd.s32 1, %s3055_s29 }
  0x61   : > { %s3898_s9 = smov (%p70_p3, %s3896_s9), 0  ;;  %s2201_s27 = sshll.u32 %s715_s28, 2 }
  0x62   : > { %s3833_s26 = scalar_select %p3413_p2, 1, 0 }
  0x63   : > { %3835 = sst [smem:[#allocation46_spill]] %s3898_s9  ;;  %s124_s12 = ssub.s32 %s3083_s24, %s3898_s9 }
  0x64   : > { %3834 = sst [smem:[#allocation45_spill]] %s3833_s26  ;;  %p125_p0 = scmp.eq.s32.totalorder %s124_s12, 0 }
  0x65   : > { %s3422_s22 = scalar_select %p219_p4, %s3055_s29, %s3836_s7  }
  0x66   : > { %s2202_s2 = sshll.u32 %s3083_s24, 2  ;;  %s719_s23 = scalar_lea.vmem [#allocation3], %s2201_s27 }
  0x67   : > { %s726_s11 = sshll.u32 %s719_s23, 4  ;;  %s3838_s13 = sld [smem:[#allocation50_spill]]  ;;  %s727_s11 = int_to_ptr.vmem [resolvable:$true] %s726_s11 }
  0x68   : > { %s3428_s3 = scalar_select %p125_p0, %s3067_s0, %s127_s1  }
  0x69   : > { %p2355_p6 = pnand %p2392_p1, %p3405_p11  ;;  %s716_s12 = scalar_lea.sflag [#allocation4], %s715_s28 }
  0x6a   : > { %3837 = sst [smem:[#allocation47_spill]] %s3428_s3  ;;  %s3094_s9 = smov 16  }
  0x6b   : > { %s3095_s23 = smov 1   ;;  %s3839_s8 = sld [smem:[#allocation56_spill]] }
  0x6c   : > { %s772_s27 = scalar_lea.vmem [#allocation11], %s3342_s30  ;;  %s3840_s28 = scalar_lea.sflag [#allocation10], %s3337_s21 }
  0x6d   : > { %s723_s26 = scalar_lea.hbm %s3838_s13, %s2202_s2  ;;  %s3841_s10 = sld [smem:[#allocation58_spill]] }
  0x6e   : > { %s724_s7 = sshll.u32 %s723_s26, 4  ;;  %s779_s26 = sshll.u32 %s772_s27, 4  ;;  %s725_s7 = int_to_ptr.hbm [resolvable:$true] %s724_s7  ;;  %s780_s26 = int_to_ptr.vmem [resolvable:$true] %s779_s26 }
  0x6f   : > { %2357 = dma.hbm_to_vmem [thread:$0]  (!%p2355_p6), %s725_s7, 64, %s727_s11, %s716_s12, %s3094_s9, %s3094_s9, %s3095_s23  }
  0x70   : > { %s806_s7 = scalar_lea.vmem [#allocation14], %s3342_s30  ;;  %s3842_s23 = scalar_lea.sflag [#allocation13], %s3337_s21 }
  0x71   : > { %s775_s19 = scalar_lea.hbm %s3839_s8, %s3079_s5  ;;  %s813_s12 = sshll.u32 %s806_s7, 4  ;;  %s814_s12 = int_to_ptr.vmem [resolvable:$true] %s813_s12 }
  0x72   : > { %s777_s13 = sshll.u32 %s775_s19, 4  ;;  %s3843_s14 = sld [smem:[#allocation62_spill]]  ;;  %s778_s13 = int_to_ptr.hbm [resolvable:$true] %s777_s13 }
  0x73   : > { %2363 = dma.hbm_to_vmem [thread:$0]  (!%p3332_p9), %s778_s13, 16, %s780_s26, %s3840_s28  }
  0x74   : > { %s809_s11 = scalar_lea.hbm %s3841_s10, %s3079_s5  ;;  %s856_s27 = scalar_lea.vmem [#allocation17], %s3342_s30 }
  0x75   : > { %s811_s9 = sshll.u32 %s809_s11, 4  ;;  %s863_s26 = sshll.u32 %s856_s27, 4  ;;  %s812_s9 = int_to_ptr.hbm [resolvable:$true] %s811_s9  ;;  %s864_s26 = int_to_ptr.vmem [resolvable:$true] %s863_s26 }
  0x76   : > { %2369 = dma.hbm_to_vmem [thread:$0]  (!%p3332_p9), %s812_s9, 16, %s814_s12, %s3842_s23  }
  0x77   : > { %s3844_s28 = scalar_lea.sflag [#allocation16], %s3337_s21  ;;  %s3845_s16 = sld [smem:[#allocation64_spill]] }
  0x78   : > { %s859_s19 = scalar_lea.hbm %s3843_s14, %s3079_s5  ;;  %s890_s8 = scalar_lea.vmem [#allocation20], %s3342_s30 }
  0x79   : > { %s861_s13 = sshll.u32 %s859_s19, 4  ;;  %s897_s10 = sshll.u32 %s890_s8, 4  ;;  %s862_s13 = int_to_ptr.hbm [resolvable:$true] %s861_s13  ;;  %s898_s10 = int_to_ptr.vmem [resolvable:$true] %s897_s10 }
  0x7a   : > { %2375 = dma.hbm_to_vmem [thread:$0]  (!%p3332_p9), %s862_s13, 16, %s864_s26, %s3844_s28  }
  0x7b   : > { %s3846_s9 = scalar_lea.sflag [#allocation19], %s3337_s21  ;;  %906 = sbr.rel (%p3315_p13) target bundleno = 2751 (0xabf), region = 104 }
  0x7c   : > { %s3476_s23 = sand.u32 (!%p3315_p13), 1, %s3063_s4  }
  0x7d   : > { %s893_s11 = scalar_lea.hbm %s3845_s16, %s3079_s5  ;;  %s2204_s1 = sshll.u32 (!%p3315_p13), %s3476_s23, 2 }
  0x7e   : > { %s895_s7 = sshll.u32 %s893_s11, 4  ;;  %s909_s15 = scalar_lea.sflag (!%p3315_p13), [#allocation4], %s3476_s23  ;;  %s896_s7 = int_to_ptr.hbm [resolvable:$true] %s895_s7 }
  0x7f   : > { %2381 = dma.hbm_to_vmem [thread:$0]  (!%p3332_p9), %s896_s7, 16, %s898_s10, %s3846_s9  }
  0x80   : > { %s3480_s19 = scalar_lea.vmem [#allocation3], %s2204_s1 }
  0x81   : > { %3010 = dma.done.wait (%p3289_p5), %s909_s15, 64  }
  0x82   : > { %3012 = vsyncadd (%p3289_p5), %s909_s15, 4294967232  ;;  %p3848_p1 = scmp.eq.s32.totalorder %s3276_s25, 0 }
  0x84   : > { %3014 = dma.done.wait (%p3848_p1), [#allocation7], 32   ;;  %p3849_p13 = pmov %p3848_p1 }
  0x85   : > { %s3850_s8 = sld [smem:[#allocation35_spill]]  ;;  %s928_s17 = sand.u32 1, %s3276_s25  }
  0x86   : > { %3016 = vsyncadd (%p3849_p13), [#allocation7], 4294967264  ;;  %s929_s21 = scalar_lea.sflag [#allocation10], %s928_s17 }
  0x8b   : > { %s3492_s20 = sand.u32 1, %s3850_s8  }
  0x8c   : > { %3018 = dma.done.wait (%p3302_p8), %s929_s21, 32  }
  0x8d   : > { %3020 = vsyncadd (%p3302_p8), %s929_s21, 4294967264  ;;  %s947_s27 = scalar_lea.sflag [#allocation13], %s928_s17 }
  0x8e   : > { %3022 = dma.done.wait (%p3302_p8), %s947_s27, 32  }
  0x8f   : > { %3024 = vsyncadd (%p3302_p8), %s947_s27, 4294967264  ;;  %s965_s18 = scalar_lea.sflag [#allocation16], %s928_s17 }
  0x90   : > { %3026 = dma.done.wait (%p3302_p8), %s965_s18, 32  }
  0x91   : > { %3028 = vsyncadd (%p3302_p8), %s965_s18, 4294967264  ;;  %s983_s7 = scalar_lea.sflag [#allocation19], %s928_s17 }
  0x92   : > { %3030 = dma.done.wait (%p3302_p8), %s983_s7, 32  }
  0x93   : > { %3032 = vsyncadd (%p3302_p8), %s983_s7, 4294967264  ;;  %p3852_p5 = pmov %p3848_p1 }
  0x94   : > { %p3853_p9 = pmov %p3848_p1 }
  0x95   : > { %3034 = dma.done.wait (%p3852_p5), [#allocation22], 256  }
  0x96   : > { %3036 = vsyncadd (%p3853_p9), [#allocation22], 4294967040  ;;  %s3854_s1 = sld [smem:[#allocation38_spill]]  ;;  %s1123_s7 = scalar_lea.vmem [#allocation24], %s3476_s23 }
  0x97   : > { %s3855_s15 = sld [smem:[#allocation37_spill]] }
  0x98   : > { %s3856_s27 = sld [smem:[#allocation48_spill]] }
  0x99   : > { %s3857_s9 = sld [smem:[#allocation49_spill]] }
  0x9a   : > { %s3858_s13 = sld [smem:[#allocation53_spill]] }
  0x9b   : > { %s3859_s24 = sld [smem:[#allocation55_spill]] }
  0x9c   : > { %p1124_p7 = scmp.lt.s32.totalorder %s3854_s1, 1  ;;  %s3860_s17 = sld [smem:[#allocation59_spill]] }
  0x9d   : > { %p1133_p10 = scmp.lt.s32.totalorder %s3855_s15, 1  ;;  %p2218_p8 = scmp.ne.s32.totalorder %s3855_s15, 0 }
  0x9e   : > { %s3900_s1 = smov (!%p1124_p7, %s3854_s1), 1 }
  0x9f   : > { %s1134_s8 = scalar_select %p1133_p10, %s3855_s15, 1 }
  0xa0   : > { %s2208_s10 = sshll.u32 %s3900_s1, 3 }
  0xa1   : > { %s1127_s18 = scalar_lea.vmem %s3856_s27, %s2208_s10  ;;  %s1131_s25 = scalar_lea.vmem %s3857_s9, %s2208_s10 }
  0xa2   : > { %s2292_s11 = sshll.u32 %s1134_s8, 4  ;;  %s2295_s2 = sshll.u32 %s1134_s8, 5 }
  0xa3   : > { %s3535_s30 = scalar_lea.vmem %s3858_s13, %s2292_s11  ;;  %s3540_s5 = scalar_lea.vmem %s3859_s24, %s2292_s11 }
  0xa4   : > { %s3545_s21 = scalar_lea.vmem %s3860_s17, %s2292_s11  ;;  %s3861_s9 = sld [smem:[#allocation61_spill]] }
  0xa5   : > { %s1117_s8 = scalar_lea.vmem [#allocation23], %s3476_s23 }
  0xa6   : > { %1157 = sbr.rel (%p2218_p8) target bundleno = 443 (0x1bb), region = 156 }
  0xaa   : > { %s3550_s10 = scalar_lea.vmem %s3861_s9, %s2295_s2 }
  0xab   : > { %v1158_v0 = vld [vmem:[%s1127_s18] sm:$0xff]  ;;  %vm1161_vm0 = vcmask 261120   ;;  %v3096_v2 = vmov 32.0   ;;  %v3097_v4 = vmov 0   ;;  %v2505_v25 = vld [vmem:[#allocation6] ss:$0 sm:$0xff] }
  0xac   : > { %v1162_v1 = vsel %vm1161_vm0, %v1158_v0, 0.0  ;;  %2507 = vrcp.f32 %v3096_v2  ;;  %v1199_v3 = vld [vmem:[%s1131_s25] sm:$0xff]  ;;  %2503 = vset.pattern.permute.xlu1 %v3097_v4  ;;  %2504 = vset.pattern.permute.xlu0 %v3097_v4  ;;  %v2506_v28 = vld [vmem:[#allocation8] ss:$0 sm:$0xff] }
  0xad   : > { %1163 = vadd.xlane.f32.xlu0 %v1162_v1  ;;  %1202 = vperm.xlu1 %2503, %v1199_v3  }
  0xb2   : > { %v2508_v5 = vpop.eup %2507 }
  0xb3   : > { %v1166_v6 = vmul.f32 32.0, %v2508_v5  ;;  %vm1170_vm1 = vweird.f32 %v2508_v5 }
  0xb5   : > { %v1167_v7 = vsub.f32 1.0, %v1166_v6 }
  0xb7   : > { %v1168_v8 = vmul.f32 %v2508_v5, %v1167_v7 }
  0xb9   : > { %v1169_v9 = vadd.f32 %v2508_v5, %v1168_v8 }
  0xbb   : > { %v1171_v10 = vsel %vm1170_vm1, %v2508_v5, %v1169_v9 }
 0x11f   : > { %v1203_v30 = vpop.permute.xlu1 %1202 }
 0x120   : > { %v1164_v11 = vpop.xlane.xlu0 %1163 }
 0x121   : > { %v1172_v12 = vmul.f32 %v1171_v10, %v1164_v11 }
 0x123   : > { %v1173_v13 = vsub.f32 %v1158_v0, %v1172_v12 }
 0x125   : > { %v1174_v14 = vmul.f32 %v1173_v13, %v1173_v13 }
 0x127   : > { %v1175_v15 = vsel %vm1161_vm0, %v1174_v14, 0.0 }
 0x128   : > { %1176 = vadd.xlane.f32.xlu0 %v1175_v15 }
 0x19b   : > { %v1177_v16 = vpop.xlane.xlu0 %1176 }
 0x19c   : > { %v1178_v17 = vmul.f32 %v1177_v16, %v1171_v10 }
 0x19e   : > { %v1179_v18 = vadd.f32 1e-07, %v1178_v17 }
 0x1a0   : > { %2509 = vrsqrt.f32 %v1179_v18  ;;  %vm1186_vm3 = vweird.f32 %v1179_v18 }
 0x1a6   : > { %v2510_v19 = vpop.eup %2509 }
 0x1a7   : > { %v1181_v20 = vmul.f32 %v2510_v19, %v1179_v18  ;;  %vm1187_vm2 = vweird.f32 %v2510_v19 }
 0x1a8   : > { %vm1188_vm4 = vmor %vm1186_vm3, %vm1187_vm2 }
 0x1a9   : > { %v1182_v21 = vmul.f32 %v2510_v19, %v1181_v20 }
 0x1ab   : > { %v1183_v22 = vmul.f32 0.5, %v1182_v21 }
 0x1ad   : > { %v1184_v23 = vsub.f32 1.5, %v1183_v22 }
 0x1af   : > { %v1185_v24 = vmul.f32 %v2510_v19, %v1184_v23 }
 0x1b1   : > { %v1189_v26 = vsel %vm1188_vm4, %v2510_v19, %v1185_v24 }
 0x1b2   : > { %v1190_v27 = vmul.f32 %v1189_v26, %v1173_v13 }
 0x1b4   : > { %v1194_v29 = vmul.f32 %v2505_v25, %v1190_v27 }
 0x1b6   : > { %v1198_v31 = vadd.f32 %v2506_v28, %v1194_v29 }
 0x1b8   : > { %v1205_v32 = vmul.f32 %v1203_v30, %v1198_v31 }
 0x1ba   : > { %1206 = vst.msk [vmem:[#allocation2] sm:$0xff] %vm1161_vm0, %v1205_v32 }
 0x1bb PF: > { %v2297_v33 = vld [vmem:[%s3535_s30 + $0x8] sm:$0xff]  ;;  %v2296_v34 = vld [vmem:[%s3535_s30] sm:$0xff]  ;;  %vm1229_vm5 = vcmask 261120   ;;  %s3862_s14 = scalar_lea.vmem [#allocation9], %s3492_s20  ;;  %s3098_s16 = smov 104   ;;  %vm1265_vm6 = vcmask 64512  }
 0x1bc   : > { %1239 = vmatpush.bf16.msra.mxu0 %v2297_v33  ;;  %v2511_v37 = vld [vmem:[%s3862_s14] ss:$0 sm:$0xff]  ;;  %s3099_s24 = smov 120   ;;  %s3100_s3 = smov 112   ;;  %v2512_v2 = vld [vmem:[%s3480_s19 + $0x2] ss:$0 sm:$0xff] }
 0x1bd   : > { %s3101_s30 = smov 96   ;;  %v2513_v5 = vld [vmem:[%s3480_s19 + $0x3] ss:$0 sm:$0xff]  ;;  %v2514_v12 = vld [vmem:[%s3480_s19] ss:$0 sm:$0xff]  ;;  %vm1434_vm7 = vcmask 1043456  }
 0x1be   : > { %v2515_v18 = vld [vmem:[%s3480_s19 + $0x1] ss:$0 sm:$0xff]  ;;  %s3102_s19 = smov 64   ;;  %s3103_s13 = smov 16   ;;  %vm1527_vm8 = vcmask 130048   ;;  %vm1529_vm9 = vcmask 195584  }
 0x1bf   : > { %s3104_s26 = smov 8   ;;  %s3105_s28 = smov 24   ;;  %vm1691_vm14 = vcmask 523264  }
 0x1c0   : > { %1240 = vmatpush.bf16.msra.mxu0 %v2296_v34  ;;  %s3863_s2 = scalar_lea.vmem [#allocation11], %s3492_s20  ;;  %s3865_s11 = scalar_lea.vmem [#allocation14], %s3492_s20 }
 0x1c1   : > { %v3560_v35 = vld [vmem:[#allocation2] sm:$0xff]  ;;  %s3866_s15 = scalar_lea.vmem [#allocation15], %s3492_s20  ;;  %s3867_s18 = scalar_lea.vmem [#allocation17], %s3492_s20 }
 0x1c2   : > { %v1208_v36 = vpack.c.bf16 %v3560_v35, %v3560_v35  ;;  %s3868_s25 = scalar_lea.vmem [#allocation18], %s3492_s20  ;;  %s3869_s1 = scalar_lea.vmem [#allocation20], %s3492_s20 }
 0x1c3   : > { %s3870_s17 = sld [smem:[#allocation37_spill]] }
 0x1c4   : > { %2227 = vmatmul.msk.bf16.vlgmr.msra.gmra.mxu0 %vm1229_vm5, %v1208_v36 }
 0x1c9   : > { %p2271_p11 = scmp.ne.s32.totalorder %s3870_s17, 1 }
 0x1ca   : > { %s3871_s12 = sld [smem:[#allocation65_spill]] (!%p2271_p11) }
 0x241   : > { %v1242_v38 = vpop.f32.mrf.mxu0 }
 0x242   : > { %v1243_v39 = vadd.f32 %v2511_v37, %v1242_v38 }
 0x244   : > { %1253 = vrot.lane.b32.xlu1 %v1243_v39, %s3098_s16  ;;  %1247 = vrot.lane.b32.xlu0 %v1243_v39, %s3099_s24  ;;  %v1256_v41 = vpack.c.bf16 %v1243_v39, %v1243_v39  ;;  %s3872_s16 = sld [smem:[#allocation66_spill]] (!%p2271_p11) }
 0x246   : > { %v1261_v42 = vunpack.c.l.b16 %v1256_v41 }
 0x248   : > { %v3567_v43 = vpack.c.b16 %v1261_v42, %v1261_v42 }
 0x249   : > { %v1244_v40 = vpop.f32.mrf.mxu0 }
 0x24c   : > { %1250 = vrot.lane.b32.xlu0 %v1243_v39, %s3100_s3 }
 0x254   : > { %1263 = vrot.lane.b32.xlu0 %v3567_v43, %s3101_s30 }
 0x2b6   : > { %v1248_v44 = vpop.permute.xlu0 %1247  ;;  %v1254_v50 = vpop.permute.xlu1 %1253 }
 0x2b7   : > { %v1257_v45 = vpack.c.bf16 %v1248_v44, %v1248_v44  ;;  %v1259_v52 = vpack.c.bf16 %v1254_v50, %v1254_v50 }
 0x2b9   : > { %v1286_v46 = vunpack.c.l.b16 %v1257_v45  ;;  %v1334_v55 = vunpack.c.l.b16 %v1259_v52 }
 0x2bb   : > { %v3570_v47 = vpack.c.b16 %v1286_v46, %v1286_v46  ;;  %v3577_v57 = vpack.c.b16 %v1334_v55, %v1334_v55 }
 0x2bd   : > { %1288 = vrot.lane.b32.xlu1 %v3570_v47, %s3101_s30 }
 0x2be   : > { %v1251_v48 = vpop.permute.xlu0 %1250 }
 0x2bf   : > { %v1258_v49 = vpack.c.bf16 %v1251_v48, %v1251_v48 }
 0x2c1   : > { %v1310_v51 = vunpack.c.l.b16 %v1258_v49 }
 0x2c3   : > { %v3573_v53 = vpack.c.b16 %v1310_v51, %v1310_v51 }
 0x2c5   : > { %1312 = vrot.lane.b32.xlu2 %v3573_v53, %s3101_s30 }
 0x2c6   : > { %v1264_v54 = vpop.permute.xlu0 %1263 }
 0x2c7   : > { %v1270_v56 = vsel %vm1265_vm6, %v1264_v54, 0 }
 0x2c8   : > { %1279 = vmatpush.bf16.xpose.msra.mxu1 %v1270_v56 }
 0x2cd   : > { %1336 = vrot.lane.b32.xlu2 %v3577_v57, %s3101_s30  ;;  %s3873_s30 = sld [smem:[#allocation68_spill]] (!%p2271_p11) }
 0x2cf   : > { %2228 = vmatmul.msk.bf16.vlgmr.msra.gmra.mxu1 %vm1265_vm6, %v1256_v41 }
 0x31f   : > { %v1313_v58 = vpop.permute.xlu2 %1312 }
 0x320   : > { %v1318_v59 = vsel %vm1265_vm6, %v1313_v58, 0 }
 0x321   : > { %1327 = vmatpush.bf16.xpose.msra.mxu3 %v1318_v59 }
 0x327   : > { %v1337_v60 = vpop.permute.xlu2 %1336 }
 0x328   : > { %2230 = vmatmul.msk.bf16.vlgmr.msra.gmra.mxu3 %vm1265_vm6, %v1258_v49  ;;  %v1342_v61 = vsel %vm1265_vm6, %v1337_v60, 0 }
 0x329   : > { %1351 = vmatpush.bf16.xpose.msrb.mxu0 %v1342_v61 }
 0x32f   : > { %v1289_v62 = vpop.permute.xlu1 %1288 }
 0x330   : > { %2231 = vmatmul.msk.bf16.vlgmr.msrb.gmra.mxu0 %vm1265_vm6, %v1259_v52  ;;  %v1294_v63 = vsel %vm1265_vm6, %v1289_v62, 0 }
 0x331   : > { %1303 = vmatpush.bf16.xpose.msra.mxu2 %v1294_v63 }
 0x338   : > { %2229 = vmatmul.msk.bf16.vlgmr.msra.gmra.mxu2 %vm1265_vm6, %v1257_v45 }
 0x34c   : > { %v1281_v0 = vpop.f32.mrf.mxu1 }
 0x34d   : > { %v1357_v9 = vmul.f32 0.35355338, %v1281_v0 }
 0x34f   : > { %v1377_v15 = vadd.f32 %v2514_v12, %v1357_v9 }
 0x351   : > { %v1381_v17 = vsel %vm1265_vm6, %v1377_v15, -inf }
 0x354   : > { %v1283_v1 = vpop.f32.mrf.mxu1 }
 0x3ab   : > { %v1329_v3 = vpop.f32.mrf.mxu3 }
 0x3ac   : > { %v1359_v4 = vmul.f32 0.35355338, %v1329_v3 }
 0x3ad   : > { %v1353_v6 = vpop.f32.mrf.mxu0 }
 0x3ae   : > { %v1360_v7 = vmul.f32 0.35355338, %v1353_v6  ;;  %v1379_v8 = vadd.f32 %v2512_v2, %v1359_v4 }
 0x3b0   : > { %v1387_v10 = vsel %vm1265_vm6, %v1379_v8, -inf  ;;  %v1380_v11 = vadd.f32 %v2513_v5, %v1360_v7 }
 0x3b1   : > { %1388 = vmax.xlane.f32.xlu2 %v1387_v10 }
 0x3b2   : > { %v1390_v13 = vsel %vm1265_vm6, %v1380_v11, -inf }
 0x3b3   : > { %v1331_v14 = vpop.f32.mrf.mxu3  ;;  %1391 = vmax.xlane.f32.xlu0 %v1390_v13  ;;  %v2299_v13 = vld [vmem:[%s3540_s5 + $0x8] sm:$0xff] }
 0x3b4   : > { %v2298_v14 = vld [vmem:[%s3540_s5] sm:$0xff]  ;;  %s3864_s5 = scalar_lea.vmem [#allocation12], %s3492_s20 }
 0x3b5   : > { %v1355_v16 = vpop.f32.mrf.mxu0 }
 0x3b9   : > { %1382 = vmax.xlane.f32.xlu2 %v1381_v17 }
 0x3bb   : > { %v1305_v19 = vpop.f32.mrf.mxu2 }
 0x3bc   : > { %v1358_v20 = vmul.f32 0.35355338, %v1305_v19 }
 0x3be   : > { %v1378_v21 = vadd.f32 %v2515_v18, %v1358_v20 }
 0x3c0   : > { %v1384_v22 = vsel %vm1265_vm6, %v1378_v21, -inf }
 0x3c1   : > { %1385 = vmax.xlane.f32.xlu1 %v1384_v22  ;;  %v2516_v22 = vld [vmem:[%s3863_s2] ss:$0 sm:$0xff] }
 0x3c3   : > { %v1307_v23 = vpop.f32.mrf.mxu2 }
 0x424   : > { %v1389_v24 = vpop.xlane.xlu2 %1388 }
 0x425   : > { %v1395_v25 = vsub.f32 %v1379_v8, %v1389_v24 }
 0x426   : > { %v1392_v26 = vpop.xlane.xlu0 %1391 }
 0x427   : > { %v1401_v27 = vmul.f32 1.442695, %v1395_v25  ;;  %v1396_v28 = vsub.f32 %v1380_v11, %v1392_v26 }
 0x429   : > { %2523 = vpow2.f32 %v1401_v27  ;;  %v1403_v29 = vmul.f32 1.442695, %v1396_v28  ;;  %v3106_v28 = vmov 32.0  }
 0x42b   : > { %2525 = vpow2.f32 %v1403_v29 }
 0x42c   : > { %v1383_v40 = vpop.xlane.xlu2 %1382 }
 0x42d   : > { %v1393_v41 = vsub.f32 %v1377_v15, %v1383_v40  ;;  %v2301_v40 = vld [vmem:[%s3545_s21 + $0x8] sm:$0xff] }
 0x42f   : > { %v2524_v30 = vpop.eup %2523  ;;  %v1397_v42 = vmul.f32 1.442695, %v1393_v41  ;;  %v2300_v41 = vld [vmem:[%s3545_s21] sm:$0xff] }
 0x430   : > { %v1411_v31 = vsel %vm1265_vm6, %v2524_v30, 0.0 }
 0x431   : > { %v2526_v32 = vpop.eup %2525  ;;  %1412 = vadd.xlane.f32.xlu2 %v1411_v31 }
 0x432   : > { %v1414_v33 = vsel %vm1265_vm6, %v2526_v32, 0.0 }
 0x433   : > { %1415 = vadd.xlane.f32.xlu0 %v1414_v33 }
 0x434   : > { %v1386_v34 = vpop.xlane.xlu1 %1385 }
 0x435   : > { %v1394_v36 = vsub.f32 %v1378_v21, %v1386_v34 }
 0x437   : > { %v1399_v37 = vmul.f32 1.442695, %v1394_v36 }
 0x439   : > { %2527 = vpow2.f32 %v1399_v37 }
 0x43a   : > { %2529 = vpow2.f32 %v1397_v42 }
 0x43f   : > { %v2528_v38 = vpop.eup %2527 }
 0x440   : > { %v1408_v39 = vsel %vm1265_vm6, %v2528_v38, 0.0  ;;  %v2530_v44 = vpop.eup %2529 }
 0x441   : > { %1409 = vadd.xlane.f32.xlu1 %v1408_v39  ;;  %v1405_v45 = vsel %vm1265_vm6, %v2530_v44, 0.0 }
 0x447   : > { %1493 = vrot.lane.b32.xlu0 %v3577_v57, %s3102_s19 }
 0x449   : > { %1472 = vrot.lane.b32.xlu2 %v3573_v53, %s3102_s19 }
 0x44f   : > { %1429 = vrot.lane.b32.xlu0 %v3567_v43, %s3102_s19 }
 0x45a   : > { %1451 = vrot.lane.b32.xlu1 %v3570_v47, %s3102_s19 }
 0x484   : > { %1406 = vadd.xlane.f32.xlu1 %v1405_v45 }
 0x4a4   : > { %v1413_v46 = vpop.xlane.xlu2 %1412 }
 0x4a5   : > { %2531 = vrcp.f32 %v1413_v46 }
 0x4a6   : > { %v1416_v50 = vpop.xlane.xlu0 %1415 }
 0x4a7   : > { %2533 = vrcp.f32 %v1416_v50 }
 0x4ab   : > { %v2532_v48 = vpop.eup %2531 }
 0x4ac   : > { %v1423_v49 = vmul.f32 %v2532_v48, %v2524_v30  ;;  %v1473_v51 = vpop.permute.xlu2 %1472 }
 0x4ad   : > { %v1478_v52 = vsel %vm1434_vm7, %v1473_v51, 0  ;;  %v2534_v47 = vpop.eup %2533 }
 0x4ae   : > { %1487 = vmatpush.bf16.msrb.mxu3 %v1478_v52  ;;  %v1427_v43 = vpack.c.bf16 %v1423_v49, %v1423_v49  ;;  %v1424_v53 = vmul.f32 %v2534_v47, %v2526_v32 }
 0x4b0   : > { %v1428_v56 = vpack.c.bf16 %v1424_v53, %v1424_v53  ;;  %v2518_v53 = vld [vmem:[%s3865_s11] ss:$0 sm:$0xff] }
 0x4b1   : > { %2234 = vmatmul.msk.bf16.vlgmr.msrb.gmra.mxu3 %vm1265_vm6, %v1427_v43  ;;  %v2517_v43 = vld [vmem:[%s3864_s5] ss:$0 sm:$0xff] }
 0x4b4   : > { %v1410_v57 = vpop.xlane.xlu1 %1409 }
 0x4b5   : > { %2535 = vrcp.f32 %v1410_v57 }
 0x4b9   : > { %v1494_v54 = vpop.permute.xlu0 %1493 }
 0x4ba   : > { %v1499_v55 = vsel %vm1434_vm7, %v1494_v54, 0 }
 0x4bb   : > { %1508 = vmatpush.bf16.msra.mxu0 %v1499_v55  ;;  %v2536_v60 = vpop.eup %2535 }
 0x4bc   : > { %v1422_v61 = vmul.f32 %v2536_v60, %v2528_v38  ;;  %v2303_v60 = vld [vmem:[%s3550_s10 + $0x8] sm:$0xff] }
 0x4be   : > { %2235 = vmatmul.msk.bf16.vlgmr.msra.gmra.mxu0 %vm1265_vm6, %v1428_v56  ;;  %v1426_v0 = vpack.c.bf16 %v1422_v61, %v1422_v61  ;;  %v2302_v61 = vld [vmem:[%s3550_s10] sm:$0xff] }
 0x4c1   : > { %v1430_v58 = vpop.permute.xlu0 %1429 }
 0x4c2   : > { %v1436_v59 = vsel %vm1434_vm7, %v1430_v58, 0  ;;  %v2305_v58 = vld [vmem:[%s3550_s10 + $0x18] sm:$0xff] }
 0x4c3   : > { %1445 = vmatpush.bf16.msrb.mxu1 %v1436_v59  ;;  %1699 = vmatpush.bf16.msra.mxu3 %v2305_v58  ;;  %v2304_v59 = vld [vmem:[%s3550_s10 + $0x10] sm:$0xff] }
 0x4c7   : > { %1561 = vmatpush.bf16.msra.mxu1 %v2299_v13  ;;  %1700 = vmatpush.bf16.msra.mxu3 %v2304_v59 }
 0x4cb   : > { %1562 = vmatpush.bf16.msra.mxu1 %v2298_v14  ;;  %1701 = vmatpush.bf16.msra.mxu3 %v2303_v60 }
 0x4cc   : > { %v1452_v62 = vpop.permute.xlu1 %1451 }
 0x4cd   : > { %v1457_v63 = vsel %vm1434_vm7, %v1452_v62, 0  ;;  %v2519_v62 = vld [vmem:[%s3866_s15] ss:$0 sm:$0xff] }
 0x4ce   : > { %1466 = vmatpush.bf16.msrb.mxu2 %v1457_v63 }
 0x4cf   : > { %1702 = vmatpush.bf16.msra.mxu3 %v2302_v61 }
 0x4d1   : > { %2233 = vmatmul.msk.bf16.vlgmr.msrb.gmra.mxu2 %vm1265_vm6, %v1426_v0 }
 0x4d2   : > { %1638 = vmatpush.bf16.msra.mxu2 %v2301_v40 }
 0x4d6   : > { %1639 = vmatpush.bf16.msra.mxu2 %v2300_v41 }
 0x4f7   : > { %v1407_v1 = vpop.xlane.xlu1 %1406 }
 0x4f8   : > { %2537 = vrcp.f32 %v1407_v1 }
 0x4f9   : > { %2539 = vrcp.f32 %v3106_v28 }
 0x4fe   : > { %v2538_v2 = vpop.eup %2537 }
 0x4ff   : > { %v1421_v3 = vmul.f32 %v2538_v2, %v2530_v44  ;;  %v2540_v29 = vpop.eup %2539 }
 0x500   : > { %v1575_v30 = vmul.f32 32.0, %v2540_v29  ;;  %vm1579_vm10 = vweird.f32 %v2540_v29 }
 0x501   : > { %v1425_v4 = vpack.c.bf16 %v1421_v3, %v1421_v3 }
 0x502   : > { %v1576_v31 = vsub.f32 1.0, %v1575_v30 }
 0x503   : > { %2232 = vmatmul.msk.bf16.vlgmr.msrb.gmra.mxu1 %vm1265_vm6, %v1425_v4 }
 0x504   : > { %v1577_v32 = vmul.f32 %v2540_v29, %v1576_v31 }
 0x506   : > { %v1578_v33 = vadd.f32 %v2540_v29, %v1577_v32  ;;  %v2521_v32 = vld [vmem:[%s3868_s25] ss:$0 sm:$0xff] }
 0x508   : > { %v3619_v34 = vsel %vm1579_vm10, %v2540_v29, %v1578_v33 }
 0x534   : > { %v1489_v5 = vpop.f32.mrf.mxu3 }
 0x535   : > { %1519 = vrot.lane.b32.xlu0 %v1489_v5, %s3103_s13 }
 0x53b   : > { %v1510_v6 = vpop.f32.mrf.mxu0 }
 0x53c   : > { %v1491_v7 = vpop.f32.mrf.mxu3 }
 0x543   : > { %v1512_v8 = vpop.f32.mrf.mxu0 }
 0x554   : > { %v1468_v9 = vpop.f32.mrf.mxu2 }
 0x555   : > { %1515 = vrot.lane.b32.xlu2 %v1468_v9, %s3104_s26 }
 0x55c   : > { %v1470_v10 = vpop.f32.mrf.mxu2 }
 0x55d   : > { %1523 = vrot.lane.b32.xlu2 %v1510_v6, %s3105_s28 }
 0x580   : > { %v1447_v11 = vpop.f32.mrf.mxu1 }
 0x588   : > { %v1449_v12 = vpop.f32.mrf.mxu1 }
 0x589   : > { %v2520_v12 = vld [vmem:[%s3867_s18] ss:$0 sm:$0xff] }
 0x5a7   : > { %v1520_v17 = vpop.permute.xlu0 %1519 }
 0x5af   : > { %v1516_v15 = vpop.permute.xlu2 %1515 }
 0x5b0   : > { %v1526_v16 = vsel %vm1265_vm6, %v1447_v11, %v1516_v15 }
 0x5b1   : > { %v1528_v19 = vsel %vm1527_vm8, %v1526_v16, %v1520_v17 }
 0x5b7   : > { %v1524_v18 = vpop.permute.xlu2 %1523 }
 0x5b8   : > { %v1530_v20 = vsel %vm1529_vm9, %v1528_v19, %v1524_v18 }
 0x5b9   : > { %v1531_v21 = vpack.c.bf16 %v1530_v20, %v1530_v20 }
 0x5bb   : > { %2244 = vmatmul.msk.bf16.vlgmr.msra.gmra.mxu1 %vm1229_vm5, %v1531_v21 }
 0x638   : > { %v1564_v23 = vpop.f32.mrf.mxu1 }
 0x639   : > { %v1565_v24 = vadd.f32 %v2516_v22, %v1564_v23 }
 0x63b   : > { %v1568_v25 = vadd.f32 %v1565_v24, %v3560_v35 }
 0x63d   : > { %v1571_v26 = vsel %vm1229_vm5, %v1568_v25, 0.0 }
 0x63e   : > { %1572 = vadd.xlane.f32.xlu0 %v1571_v26 }
 0x640   : > { %v1566_v27 = vpop.f32.mrf.mxu1 }
 0x6b1   : > { %v1573_v36 = vpop.xlane.xlu0 %1572 }
 0x6b2   : > { %v1581_v37 = vmul.f32 %v3619_v34, %v1573_v36  ;;  %v2522_v36 = vld [vmem:[%s3869_s1] ss:$0 sm:$0xff] }
 0x6b4   : > { %v1582_v35 = vsub.f32 %v1568_v25, %v1581_v37 }
 0x6b6   : > { %v1583_v38 = vmul.f32 %v1582_v35, %v1582_v35 }
 0x6b8   : > { %v1584_v39 = vsel %vm1229_vm5, %v1583_v38, 0.0 }
 0x6b9   : > { %1585 = vadd.xlane.f32.xlu2 %v1584_v39 }
 0x72c   : > { %v1586_v42 = vpop.xlane.xlu2 %1585 }
 0x72d   : > { %v1587_v44 = vmul.f32 %v1586_v42, %v3619_v34 }
 0x72f   : > { %v1588_v45 = vadd.f32 1e-07, %v1587_v44 }
 0x731   : > { %2541 = vrsqrt.f32 %v1588_v45  ;;  %vm1595_vm12 = vweird.f32 %v1588_v45 }
 0x737   : > { %v2542_v46 = vpop.eup %2541 }
 0x738   : > { %v1590_v48 = vmul.f32 %v2542_v46, %v1588_v45  ;;  %vm1596_vm11 = vweird.f32 %v2542_v46 }
 0x739   : > { %vm1597_vm13 = vmor %vm1595_vm12, %vm1596_vm11 }
 0x73a   : > { %v1591_v49 = vmul.f32 %v2542_v46, %v1590_v48 }
 0x73c   : > { %v1592_v50 = vmul.f32 0.5, %v1591_v49 }
 0x73e   : > { %v1593_v51 = vsub.f32 1.5, %v1592_v50 }
 0x740   : > { %v1594_v52 = vmul.f32 %v2542_v46, %v1593_v51 }
 0x742   : > { %v1598_v47 = vsel %vm1597_vm13, %v2542_v46, %v1594_v52 }
 0x743   : > { %v1599_v54 = vmul.f32 %v1598_v47, %v1582_v35 }
 0x745   : > { %v1603_v55 = vmul.f32 %v2517_v43, %v1599_v54 }
 0x747   : > { %v1607_v56 = vadd.f32 %v2518_v53, %v1603_v55 }
 0x749   : > { %v1608_v57 = vpack.c.bf16 %v1607_v56, %v1607_v56 }
 0x74b   : > { %2253 = vmatmul.msk.bf16.vlgmr.msra.gmra.mxu2 %vm1229_vm5, %v1608_v57 }
 0x7ce   : > { %v1641_v63 = vpop.f32.mrf.mxu2 }
 0x7cf   : > { %v1642_v0 = vadd.f32 %v2519_v62, %v1641_v63 }
 0x7d1   : > { %v1645_v1 = vmul.f32 %v1642_v0, %v1642_v0 }
 0x7d3   : > { %v1646_v2 = vmul.f32 %v1645_v1, %v1642_v0 }
 0x7d5   : > { %v1647_v3 = vmul.f32 0.044715, %v1646_v2 }
 0x7d6   : > { %v1643_v4 = vpop.f32.mrf.mxu2 }
 0x7d7   : > { %v1648_v5 = vadd.f32 %v1647_v3, %v1642_v0 }
 0x7d9   : > { %v1649_v6 = vmul.f32 0.7978846, %v1648_v5 }
 0x7db   : > { %2543 = vtanh.f32 %v1649_v6 }
 0x7e1   : > { %v2544_v7 = vpop.eup %2543 }
 0x7e2   : > { %v1651_v8 = vadd.f32 1.0, %v2544_v7 }
 0x7e4   : > { %v1652_v9 = vmul.f32 0.5, %v1651_v8 }
 0x7e6   : > { %v1653_v10 = vmul.f32 %v1652_v9, %v1642_v0 }
 0x7e8   : > { %v1654_v11 = vpack.c.bf16 %v1653_v10, %v1653_v10 }
 0x7ea   : > { %2270 = vmatmul.msk.bf16.vlgmr.msra.gmra.mxu3 %vm1691_vm14, %v1654_v11 }
 0x86d   : > { %v1704_v13 = vpop.f32.mrf.mxu3 }
 0x86e   : > { %v1705_v14 = vadd.f32 %v2520_v12, %v1704_v13 }
 0x870   : > { %v1708_v15 = vadd.f32 %v1705_v14, %v1607_v56 }
 0x872   : > { %v1711_v16 = vsel %vm1229_vm5, %v1708_v15, 0.0 }
 0x873   : > { %1712 = vadd.xlane.f32.xlu1 %v1711_v16 }
 0x875   : > { %v1706_v17 = vpop.f32.mrf.mxu3 }
 0x8e6   : > { %v1713_v18 = vpop.xlane.xlu1 %1712 }
 0x8e7   : > { %v1714_v19 = vmul.f32 %v1713_v18, %v3619_v34 }
 0x8e9   : > { %v1715_v20 = vsub.f32 %v1708_v15, %v1714_v19 }
 0x8eb   : > { %v1716_v21 = vmul.f32 %v1715_v20, %v1715_v20 }
 0x8ed   : > { %v1717_v22 = vsel %vm1229_vm5, %v1716_v21, 0.0 }
 0x8ee   : > { %1718 = vadd.xlane.f32.xlu1 %v1717_v22 }
 0x961   : > { %v1719_v23 = vpop.xlane.xlu1 %1718 }
 0x962   : > { %v1720_v24 = vmul.f32 %v1719_v23, %v3619_v34 }
 0x964   : > { %v1721_v25 = vadd.f32 1e-07, %v1720_v24 }
 0x966   : > { %2545 = vrsqrt.f32 %v1721_v25  ;;  %vm1728_vm0 = vweird.f32 %v1721_v25 }
 0x96c   : > { %v2546_v26 = vpop.eup %2545 }
 0x96d   : > { %v1723_v27 = vmul.f32 %v2546_v26, %v1721_v25  ;;  %vm1729_vm15 = vweird.f32 %v2546_v26 }
 0x96e   : > { %vm1730_vm1 = vmor %vm1728_vm0, %vm1729_vm15 }
 0x96f   : > { %v1724_v28 = vmul.f32 %v2546_v26, %v1723_v27 }
 0x971   : > { %v1725_v29 = vmul.f32 0.5, %v1724_v28 }
 0x973   : > { %v1726_v30 = vsub.f32 1.5, %v1725_v29 }
 0x975   : > { %v1727_v31 = vmul.f32 %v2546_v26, %v1726_v30 }
 0x977   : > { %v1731_v33 = vsel %vm1730_vm1, %v2546_v26, %v1727_v31 }
 0x978   : > { %v1732_v37 = vmul.f32 %v1731_v33, %v1715_v20 }
 0x97a   : > { %v1736_v35 = vmul.f32 %v2521_v32, %v1732_v37  ;;  %1745 = sbr.rel (%p2271_p11) target bundleno = 2710 (0xa96), region = 160 }
 0x97c   : > { %v1740_v38 = vadd.f32 %v2522_v36, %v1736_v35 }
 0x97e   : > { %1741 = vst.msk [vmem:[#allocation2] sm:$0xff] %vm1229_vm5, %v1740_v38 }
 0x97f   : > { %vm1746_vm2 = vcmask 253952   ;;  %v2307_v34 = vld [vmem:[%s3871_s12 + $0x8] sm:$0xff]  ;;  %v2306_v39 = vld [vmem:[%s3871_s12] sm:$0xff]  ;;  %v1748_v40 = vpack.c.bf16 %v1740_v38, %v1740_v38 }
 0x980   : > { %1747 = vst.msk [vmem:[%s1123_s7] sm:$0x1] %vm1746_vm2, %v1740_v38  ;;  %1775 = vmatpush.bf16.msra.mxu0 %v2307_v34  ;;  %v2309_v41 = vld [vmem:[#allocation21 + $0x8] sm:$0xff]  ;;  %v2308_v42 = vld [vmem:[#allocation21] sm:$0xff]  ;;  %v1753_v44 = vld [vmem:[%s3872_s16] sm:$0x1] }
 0x981   : > { %1810 = vmatpush.bf16.msra.mxu1 %v2309_v41  ;;  %v1788_v51 = vld [vmem:[%s3873_s30] sm:$0x1] }
 0x984   : > { %1776 = vmatpush.bf16.msra.mxu0 %v2306_v39 }
 0x985   : > { %1811 = vmatpush.bf16.msra.mxu1 %v2308_v42 }
 0x987   : > { %2280 = vmatmul.msk.bf16.vlgmr.msra.gmra.mxu0 %vm1229_vm5, %v1748_v40 }
 0xa04   : > { %v1778_v45 = vpop.f32.mrf.mxu0 }
 0xa05   : > { %v1779_v46 = vadd.f32 %v1778_v45, %v1753_v44 }
 0xa07   : > { %2547 = vtanh.f32 %v1779_v46 }
 0xa0c   : > { %v1780_v48 = vpop.f32.mrf.mxu0 }
 0xa0d   : > { %v2548_v49 = vpop.eup %2547 }
 0xa0e   : > { %v1783_v50 = vpack.c.bf16 %v2548_v49, %v2548_v49 }
 0xa10   : > { %2289 = vmatmul.msk.bf16.vlgmr.msra.gmra.mxu1 %vm1229_vm5, %v1783_v50 }
 0xa8d   : > { %v1813_v52 = vpop.f32.mrf.mxu1 }
 0xa8e   : > { %v1814_v43 = vadd.f32 %v1813_v52, %v1788_v51 }
 0xa90   : > { %1817 = vst [vmem:[%s1117_s8] sm:$0x1] %v1814_v43 }
 0xa95   : > { %v1815_v47 = vpop.f32.mrf.mxu1 }
 0xa96 PF: > { %s3874_s19 = sld [smem:[#allocation38_spill]]  ;;  %s1833_s15 = sshll.u32 %s1117_s8, 4  ;;  %s1834_s15 = int_to_ptr.vmem [resolvable:$true] %s1833_s15 }
 0xa97   : > { %s3875_s28 = sld [smem:[#allocation69_spill]]  ;;  %s1819_s25 = scalar_lea.sflag [#allocation5], %s3476_s23 }
 0xa9d   : > { %s3876_s2 = smov %s3875_s28  ;;  %s1831_s11 = scalar_lea.hbm %s3875_s28, %s3874_s19 }
 0xa9e   : > { %s1835_s18 = sshll.u32 %s1831_s11, 4  ;;  %s2929_s9 = scalar_lea.hbm %s3876_s2, 2  ;;  %s1836_s18 = int_to_ptr.hbm [resolvable:$true] %s1835_s18 }
 0xa9f   : > { %s2923_s1 = sshra.s32 %s1836_s18, 4  ;;  %s2924_s1 = int_to_ptr.hbm [resolvable:$true] %s2923_s1 }
 0xaa0   : > { %s2925_s17 = scalar_lea.hbm %s2924_s1, 1  ;;  %p2930_p6 = scmp.lt.s32.totalorder %s2924_s1, %s3876_s2 }
 0xaa1   : > { %p2926_p3 = scmp.ne.s32.totalorder %s2924_s1, %s2925_s17  ;;  %p2931_p1 = scmp.lt.s32.totalorder %s2929_s9, %s2925_s17 }
 0xaa3   : > { %p2927_p4 = pnand %p2926_p3, %p3413_p2  ;;  %p2932_p13 = por %p2931_p1, %p2930_p6 }
 0xaa5   : > { %p2928_p0 = pneg %p2927_p4 }
 0xaa7   : > { %p2933_p5 = pnand %p2932_p13, %p2928_p0 }
 0xaa9   : > { %2936 = shalt.err (!%p2933_p5)
}
 0xaaa   : > { %2340 = dma.vmem_to_hbm [thread:$0]  (%p3413_p2), %s1834_s15, 16, %s1836_s18, %s1819_s25  }
 0xaab   : > { %s3878_s16 = sld [smem:[#allocation70_spill]]  ;;  %s1846_s3 = sshll.u32 %s1123_s7, 4  ;;  %s1847_s3 = int_to_ptr.vmem [resolvable:$true] %s1846_s3 }
 0xaac   : > { %s1823_s13 = scalar_lea.sflag [#allocation25], %s3476_s23 }
 0xab1   : > { %s1844_s24 = scalar_lea.hbm %s3878_s16, %s3874_s19  ;;  %s2957_s15 = scalar_lea.hbm %s3878_s16, 2 }
 0xab2   : > { %s1848_s30 = sshll.u32 %s1844_s24, 4  ;;  %s1849_s30 = int_to_ptr.hbm [resolvable:$true] %s1848_s30 }
 0xab3   : > { %s2951_s26 = sshra.s32 %s1849_s30, 4  ;;  %s2952_s26 = int_to_ptr.hbm [resolvable:$true] %s2951_s26 }
 0xab4   : > { %s2953_s28 = scalar_lea.hbm %s2952_s26, 1  ;;  %p2958_p8 = scmp.lt.s32.totalorder %s2952_s26, %s3878_s16 }
 0xab5   : > { %p2954_p9 = scmp.ne.s32.totalorder %s2952_s26, %s2953_s28  ;;  %p2959_p11 = scmp.lt.s32.totalorder %s2957_s15, %s2953_s28 }
 0xab7   : > { %p2955_p7 = pnand %p2954_p9, %p3413_p2  ;;  %p2960_p3 = por %p2959_p11, %p2958_p8 }
 0xab9   : > { %p2956_p10 = pneg %p2955_p7 }
 0xabb   : > { %p2961_p4 = pnand %p2960_p3, %p2956_p10 }
 0xabd   : > { %2964 = shalt.err (!%p2961_p4)
}
 0xabe   : > { %2341 = dma.vmem_to_hbm [thread:$0]  (%p3413_p2), %s1847_s3, 16, %s1849_s30, %s1823_s13  }
 0xabf PF: > { %s3879_s23 = sld [smem:[#allocation36_spill]]  ;;  %p2396_p0 = scmp.ge.s32.totalorder %s3087_s6, 2 }
 0xac1   : > { %p2383_p6 = pnand %p2396_p0, %p3308_p12 }
 0xac3   : > { %p2384_p1 = pneg %p2383_p6 }
 0xac5   : > { %s1860_s19 = sand.u32 1, %s3879_s23  }
 0xac6   : > { %s1861_s17 = scalar_lea.sflag [#allocation5], %s1860_s19 }
 0xac7   : > { %3038 = dma.done.wait (%p2384_p1), %s1861_s17, 16  }
 0xac8   : > { %3040 = vsyncadd (%p2384_p1), %s1861_s17, 4294967280  ;;  %s1870_s21 = scalar_lea.sflag [#allocation25], %s1860_s19 }
 0xac9   : > { %3042 = dma.done.wait (%p2384_p1), %s1870_s21, 16  }
 0xaca   : > { %3044 = vsyncadd (%p2384_p1), %s1870_s21, 4294967280  ;;  %s56_s6 = sadd.s32 1, %s3087_s6   ;;  %s3881_s3 = sld [smem:[#allocation35_spill]] }
 0xacb   : > { %p53_p13 = scmp.ge.s32.totalorder %s56_s6, 6   ;;  %s3882_s5 = sld [smem:[#allocation47_spill]] }
 0xacc   : > { %s3883_s23 = sld [smem:[#allocation39_spill]]  ;;  %s3887_s28 = smov %s3055_s29 }
 0xacd   : > { %s3884_s1 = sld [smem:[#allocation40_spill]]  ;;  %s3888_s29 = smov %s3422_s22 }
 0xace   : > { %s3885_s27 = sld [smem:[#allocation44_spill]]  ;;  %s3889_s30 = smov %s3063_s4 }
 0xacf   : > { %s3886_s24 = sld [smem:[#allocation46_spill]]  ;;  %s3890_s4 = smov %s3067_s0 }
 0xad0   :  { %55 = sbr.rel (!%p53_p13) target bundleno = 45 (0x2d), region = 300 }
 0xad1   : > { %s3891_s0 = smov %s3882_s5 }
 0xad4   : > { %s3892_s5 = smov %s3885_s27 }
 0xad5   :  { %1875 = vsyncpa [#allocation4], 1 }
 0xad6   :  { %1877 = vsyncpa [#allocation4 + $0x1], 1 }
 0xad7   :  { %1878 = vsyncpa [#allocation7], 1 }
 0xad8   :  { %1879 = vsyncpa [#allocation10], 1 }
 0xad9   :  { %1881 = vsyncpa [#allocation10 + $0x1], 1 }
 0xada   :  { %1882 = vsyncpa [#allocation13], 1 }
 0xadb   :  { %1884 = vsyncpa [#allocation13 + $0x1], 1 }
 0xadc   :  { %1885 = vsyncpa [#allocation16], 1 }
 0xadd   :  { %1887 = vsyncpa [#allocation16 + $0x1], 1 }
 0xade   :  { %1888 = vsyncpa [#allocation19], 1 }
 0xadf   :  { %1890 = vsyncpa [#allocation19 + $0x1], 1 }
 0xae0   :  { %1891 = vsyncpa [#allocation22], 1 }
 0xae1   :  { %1892 = vsyncpa [#allocation5], 1 }
 0xae2   :  { %1894 = vsyncpa [#allocation5 + $0x1], 1 }
 0xae3   :  { %1895 = vsyncpa [#allocation25], 1 }
 0xae4   :  { %1897 = vsyncpa [#allocation25 + $0x1], 1 }

</bundles_post_ra>
